<compile_context>
chip_gen: v7x
topology: tpu7x:2x2x1
jax: 0.10.0
libtpu: 0.0.40
codegen_flags: <defaults>
</compile_context>

<pallas_src>
import jax
import jax.numpy as jnp
from jax.experimental import pallas as pl
from jax.experimental.pallas import tpu as pltpu


IN_FEATURES = 2048
HIDDEN = 512
HEAD_DIMS = (11, 168, 7)
HEAD_TOTAL = sum(HEAD_DIMS)   # 186
HEAD_PADDED = 256             # lane-dense fused head width (zero-padded cols)


def _round_up(v, m):
    return (v + m - 1) // m * m


def cnn_head_kernel(x_ref, w_ref, b_ref, wh_ref, bh_ref, o_ref, h_acc):
    """One (TB x TK) trunk step; fused heads run on the last K step."""
    k = pl.program_id(1)

    @pl.when(k == 0)
    def _():
        h_acc[...] = jnp.zeros_like(h_acc)

    # Trunk: accumulate x @ W in f32 regardless of operand dtype.
    h_acc[...] += jnp.dot(x_ref[...], w_ref[...],
                          preferred_element_type=jnp.float32)

    @pl.when(k == pl.num_programs(1) - 1)
    def _():
        h = h_acc[...] + b_ref[...]
        # Single fused, lane-dense (512 x 256) head matmul + fused bias.
        o_ref[...] = (jnp.dot(h.astype(wh_ref.dtype), wh_ref[...],
                              preferred_element_type=jnp.float32)
                      + bh_ref[...]).astype(o_ref.dtype)


@jax.jit
def _cnn_head_fused(x, w, b, wh, bh):
    B = x.shape[0]
    # Batch tile: multiples of 8 sublanes, capped at one 128-row MXU block.
    TB = min(128, _round_up(B, 8))
    B_pad = _round_up(B, TB)
    if B_pad != B:
        x = jnp.pad(x, ((0, B_pad - B), (0, 0)))
    nB = B_pad // TB

    # Single batch tile -> split K into 2 steps to overlap the trunk-weight DMA
    # with MXU work.  Multiple batch tiles -> keep the trunk weight as one
    # resident block (constant index_map => fetched once, amortized over B).
    nK = 2 if nB == 1 else 1
    TK = IN_FEATURES // nK

    isz = lambda a: jnp.dtype(a.dtype).itemsize
    cost = pl.CostEstimate(
        flops=2 * B_pad * IN_FEATURES * HIDDEN
              + 2 * B_pad * HIDDEN * HEAD_PADDED,
        transcendentals=0,
        bytes_accessed=(x.size * isz(x) + w.size * isz(w) + wh.size * isz(wh)
                        + b.size * isz(b) + bh.size * isz(bh)
                        + B_pad * HEAD_PADDED * 4),
    )

    out = pl.pallas_call(
        cnn_head_kernel,
        grid=(nB, nK),
        in_specs=[
            pl.BlockSpec((TB, TK), lambda i, k: (i, k)),               # x tile
            pl.BlockSpec((TK, HIDDEN), lambda i, k: (k, 0)),           # trunk W
            pl.BlockSpec((1, HIDDEN), lambda i, k: (0, 0)),            # trunk b
            pl.BlockSpec((HIDDEN, HEAD_PADDED), lambda i, k: (0, 0)),  # fused head W
            pl.BlockSpec((1, HEAD_PADDED), lambda i, k: (0, 0)),       # fused head b
        ],
        out_specs=pl.BlockSpec((TB, HEAD_PADDED), lambda i, k: (i, 0)),
        out_shape=jax.ShapeDtypeStruct((B_pad, HEAD_PADDED), jnp.float32),
        scratch_shapes=[pltpu.VMEM((TB, HIDDEN), jnp.float32)],
        compiler_params=pltpu.CompilerParams(
            dimension_semantics=("parallel", "arbitrary"),
            vmem_limit_bytes=24 << 20,
        ),
        cost_estimate=cost,
    )(x, w, b, wh, bh)

    n1, n2, n3 = HEAD_DIMS
    x1 = out[:B, :n1]
    x2 = out[:B, n1:n1 + n2]
    x3 = out[:B, n1 + n2:n1 + n2 + n3]
    return x1, x2, x3


def fuse_head_params(w, b, w1, b1, w2, b2, w3, b3, compute_dtype=jnp.float32):
    """Concatenate + zero-pad the three heads into one lane-dense (512, 256)
    weight and (1, 256) bias.  Matmul operands cast to `compute_dtype`
    (biases and accumulation stay f32)."""
    wh = jnp.concatenate([w1, w2, w3], axis=1)          # (512, 186)
    bh = jnp.concatenate([b1, b2, b3], axis=1)          # (1, 186)
    pad = HEAD_PADDED - HEAD_TOTAL
    wh = jnp.pad(wh, ((0, 0), (0, pad)))                # zero-padded -> sliced cols unaffected
    bh = jnp.pad(bh, ((0, 0), (0, pad)))
    return (w.astype(compute_dtype), b.astype(jnp.float32),
            wh.astype(compute_dtype), bh.astype(jnp.float32))


def cnn_head(x, w, b, w1, b1, w2, b2, w3, b3, compute_dtype=jnp.float32):
    w_, b_, wh, bh = fuse_head_params(w, b, w1, b1, w2, b2, w3, b3, compute_dtype)
    return _cnn_head_fused(x.astype(compute_dtype), w_, b_, wh, bh)


def init_linear_params(key, in_features, out_features):
    """PyTorch-style Linear init: U(-1/sqrt(in), 1/sqrt(in)); W pre-transposed."""
    kw, kb = jax.random.split(key)
    bound = 1.0 / jnp.sqrt(jnp.float32(in_features))
    w = jax.random.uniform(kw, (in_features, out_features), jnp.float32,
                           minval=-bound, maxval=bound)
    b = jax.random.uniform(kb, (1, out_features), jnp.float32,
                           minval=-bound, maxval=bound)
    return w, b


if __name__ == "__main__":
    key = jax.random.PRNGKey(0)
    k_x, k_fc, k_fc1, k_fc2, k_fc3 = jax.random.split(key, 5)

    B = 8
    x = jax.random.normal(k_x, (B, IN_FEATURES), jnp.float32)

    w, b = init_linear_params(k_fc, IN_FEATURES, HIDDEN)
    w1, b1 = init_linear_params(k_fc1, HIDDEN, 11)
    w2, b2 = init_linear_params(k_fc2, HIDDEN, 168)
    w3, b3 = init_linear_params(k_fc3, HIDDEN, 7)

    # f32 path (matches PyTorch module numerics).
    x1, x2, x3 = cnn_head(x, w, b, w1, b1, w2, b2, w3, b3)
    jax.block_until_ready((x1, x2, x3))

    # Pure-JAX reference.
    h_ref = x @ w + b
    r1, r2, r3 = h_ref @ w1 + b1, h_ref @ w2 + b2, h_ref @ w3 + b3
    assert x1.shape == (B, 11) and x2.shape == (B, 168) and x3.shape == (B, 7)
    assert jnp.allclose(x1, r1, atol=1e-4, rtol=1e-4)
    assert jnp.allclose(x2, r2, atol=1e-4, rtol=1e-4)
    assert jnp.allclose(x3, r3, atol=1e-4, rtol=1e-4)

    # Optional bf16 compute path (halves HBM weight traffic; f32 accumulation).
    y1, y2, y3 = cnn_head(x, w, b, w1, b1, w2, b2, w3, b3,
                          compute_dtype=jnp.bfloat16)
    jax.block_until_ready((y1, y2, y3))
    assert jnp.allclose(y1, r1, atol=1e-1, rtol=1e-1)
    assert jnp.allclose(y2, r2, atol=1e-1, rtol=1e-1)
    assert jnp.allclose(y3, r3, atol=1e-1, rtol=1e-1)

    print("KERNEL_OK")
</pallas_src>

<mosaic_0001>
module attributes {stable_mosaic.version = 11 : i64} {
  func.func @cnn_head_kernel(%arg0: i32, %arg1: i32, %arg2: memref<8x1024xf32, #tpu.memory_space<vmem>>, %arg3: memref<1024x512xf32, #tpu.memory_space<vmem>>, %arg4: memref<1x512xf32, #tpu.memory_space<vmem>>, %arg5: memref<512x256xf32, #tpu.memory_space<vmem>>, %arg6: memref<1x256xf32, #tpu.memory_space<vmem>>, %arg7: memref<8x256xf32, #tpu.memory_space<vmem>>, %arg8: memref<8x512xf32, #tpu.memory_space<vmem>>) attributes {dimension_semantics = [#tpu.dimension_semantics<parallel>, #tpu.dimension_semantics<arbitrary>], iteration_bounds = array<i64: 1, 2>, scalar_prefetch = 0 : i64, scratch_operands = 1 : i64, tpu.core_type = #tpu.core_type<tc>, window_params = [{transform_indices = @transform_0, window_bounds = array<i64: 8, 1024>}, {transform_indices = @transform_1, window_bounds = array<i64: 1024, 512>}, {pipeline_mode = #tpu.pipeline_mode<synchronous>, transform_indices = @transform_2, window_bounds = array<i64: 1, 512>}, {pipeline_mode = #tpu.pipeline_mode<synchronous>, transform_indices = @transform_3, window_bounds = array<i64: 512, 256>}, {pipeline_mode = #tpu.pipeline_mode<synchronous>, transform_indices = @transform_4, window_bounds = array<i64: 1, 256>}, {transform_indices = @transform_5, window_bounds = array<i64: 8, 256>}]} {
    %c0_i32 = arith.constant 0 : i32
    %0 = arith.cmpi eq, %arg1, %c0_i32 : i32
    %1 = arith.extui %0 : i1 to i32
    %c0_i32_0 = arith.constant 0 : i32
    %2 = arith.cmpi ne, %1, %c0_i32_0 : i32
    scf.if %2 {
      %cst_9 = arith.constant 0.000000e+00 : f32
      %12 = vector.broadcast %cst_9 : f32 to vector<8x512xf32>
      %c0_10 = arith.constant 0 : index
      %c0_11 = arith.constant 0 : index
      %13 = vector.load %arg8[%c0_10, %c0_11] : memref<8x512xf32, #tpu.memory_space<vmem>>, vector<8x512xf32>
      tpu.vector_store %arg8[%c0_10, %c0_11], %12 {strides = array<i32>} : memref<8x512xf32, #tpu.memory_space<vmem>>, vector<8x512xf32>,
    } else {
    }
    %c0 = arith.constant 0 : index
    %c0_1 = arith.constant 0 : index
    %3 = vector.load %arg8[%c0, %c0_1] : memref<8x512xf32, #tpu.memory_space<vmem>>, vector<8x512xf32>
    %c0_2 = arith.constant 0 : index
    %c0_3 = arith.constant 0 : index
    %4 = vector.load %arg2[%c0_2, %c0_3] : memref<8x1024xf32, #tpu.memory_space<vmem>>, vector<8x1024xf32>
    %c0_4 = arith.constant 0 : index
    %c0_5 = arith.constant 0 : index
    %5 = vector.load %arg3[%c0_4, %c0_5] : memref<1024x512xf32, #tpu.memory_space<vmem>>, vector<1024x512xf32>
    %cst = arith.constant dense<0.000000e+00> : vector<8x512xf32>
    %6 = tpu.matmul %4, %5, %cst {dimension_numbers = #tpu.dot_dimension_numbers<[1], [0], [0], [1], [0, 0, 1, 1], [], []>} : vector<8x1024xf32>, vector<1024x512xf32>, vector<8x512xf32> -> vector<8x512xf32>
    %7 = arith.addf %3, %6 : vector<8x512xf32>
    %c0_6 = arith.constant 0 : index
    %c0_7 = arith.constant 0 : index
    %8 = vector.load %arg8[%c0_6, %c0_7] : memref<8x512xf32, #tpu.memory_space<vmem>>, vector<8x512xf32>
    tpu.vector_store %arg8[%c0_6, %c0_7], %7 {strides = array<i32>} : memref<8x512xf32, #tpu.memory_space<vmem>>, vector<8x512xf32>,
    %c1_i32 = arith.constant 1 : i32
    %9 = arith.cmpi eq, %arg1, %c1_i32 : i32
    %10 = arith.extui %9 : i1 to i32
    %c0_i32_8 = arith.constant 0 : i32
    %11 = arith.cmpi ne, %10, %c0_i32_8 : i32
    scf.if %11 {
      %c0_9 = arith.constant 0 : index
      %c0_10 = arith.constant 0 : index
      %12 = vector.load %arg8[%c0_9, %c0_10] : memref<8x512xf32, #tpu.memory_space<vmem>>, vector<8x512xf32>
      %c0_11 = arith.constant 0 : index
      %c0_12 = arith.constant 0 : index
      %13 = vector.load %arg4[%c0_11, %c0_12] : memref<1x512xf32, #tpu.memory_space<vmem>>, vector<1x512xf32>
      %14 = vector.broadcast %13 : vector<1x512xf32> to vector<8x512xf32>
      %15 = arith.addf %12, %14 : vector<8x512xf32>
      %c0_13 = arith.constant 0 : index
      %c0_14 = arith.constant 0 : index
      %16 = vector.load %arg5[%c0_13, %c0_14] : memref<512x256xf32, #tpu.memory_space<vmem>>, vector<512x256xf32>
      %cst_15 = arith.constant dense<0.000000e+00> : vector<8x256xf32>
      %17 = tpu.matmul %15, %16, %cst_15 {dimension_numbers = #tpu.dot_dimension_numbers<[1], [0], [0], [1], [0, 0, 1, 1], [], []>} : vector<8x512xf32>, vector<512x256xf32>, vector<8x256xf32> -> vector<8x256xf32>
      %c0_16 = arith.constant 0 : index
      %c0_17 = arith.constant 0 : index
      %18 = vector.load %arg6[%c0_16, %c0_17] : memref<1x256xf32, #tpu.memory_space<vmem>>, vector<1x256xf32>
      %19 = vector.broadcast %18 : vector<1x256xf32> to vector<8x256xf32>
      %20 = arith.addf %17, %19 : vector<8x256xf32>
      %c0_18 = arith.constant 0 : index
      %c0_19 = arith.constant 0 : index
      %21 = vector.load %arg7[%c0_18, %c0_19] : memref<8x256xf32, #tpu.memory_space<vmem>>, vector<8x256xf32>
      tpu.vector_store %arg7[%c0_18, %c0_19], %20 {strides = array<i32>} : memref<8x256xf32, #tpu.memory_space<vmem>>, vector<8x256xf32>,
    } else {
    }
    return
  }
  func.func @transform_0(%arg0: i32, %arg1: i32) -> (i32, i32) {
    %c0_i32 = arith.constant 0 : i32
    return %arg0, %arg1 : i32, i32
  }
  func.func @transform_1(%arg0: i32, %arg1: i32) -> (i32, i32) {
    %c0_i32 = arith.constant 0 : i32
    %c0_i32_0 = arith.constant 0 : i32
    return %arg1, %c0_i32 : i32, i32
  }
  func.func @transform_2(%arg0: i32, %arg1: i32) -> (i32, i32) {
    %c0_i32 = arith.constant 0 : i32
    %c0_i32_0 = arith.constant 0 : i32
    %c0_i32_1 = arith.constant 0 : i32
    return %c0_i32, %c0_i32_0 : i32, i32
  }
  func.func @transform_3(%arg0: i32, %arg1: i32) -> (i32, i32) {
    %c0_i32 = arith.constant 0 : i32
    %c0_i32_0 = arith.constant 0 : i32
    %c0_i32_1 = arith.constant 0 : i32
    return %c0_i32, %c0_i32_0 : i32, i32
  }
  func.func @transform_4(%arg0: i32, %arg1: i32) -> (i32, i32) {
    %c0_i32 = arith.constant 0 : i32
    %c0_i32_0 = arith.constant 0 : i32
    %c0_i32_1 = arith.constant 0 : i32
    return %c0_i32, %c0_i32_0 : i32, i32
  }
  func.func @transform_5(%arg0: i32, %arg1: i32) -> (i32, i32) {
    %c0_i32 = arith.constant 0 : i32
    %c0_i32_0 = arith.constant 0 : i32
    return %arg0, %c0_i32 : i32, i32
  }
}

</mosaic_0001>

<bundles_post_ra>
// kernel: _cnn_head_fused.1
= control target key start
LH: loop header
LB: loop body
LE: loop exit
PB: predicated region body
PF: predicated region fallthrough
CT: control target
= control target key end

     0   :  { %10 = vsyncpa [#allocation4], 0  ;;  %s3733_s0 = inlined_call_operand.hbm [shape: f32[8,2048], index: 0, kind: input, shape index: {}]   ;;  %s3734_s1 = inlined_call_operand.hbm [shape: f32[2048,512], index: 1, kind: input, shape index: {}]   ;;  %s3735_s2 = inlined_call_operand.hbm [shape: f32[1,512], index: 2, kind: input, shape index: {}]   ;;  %s3736_s3 = inlined_call_operand.hbm [shape: f32[512,256], index: 3, kind: input, shape index: {}]   ;;  %s3737_s4 = inlined_call_operand.hbm [shape: f32[1,256], index: 4, kind: input, shape index: {}]   ;;  %s3738_s5 = inlined_call_operand.vmem [shape: f32[8,256], index: 5, kind: output, shape index: {}]  }
   0x1   :  { %12 = vsyncpa [#allocation4 + $0x1], 0 }
   0x2   :  { %13 = vsyncpa [#allocation6], 0 }
   0x3   :  { %15 = vsyncpa [#allocation6 + $0x1], 0 }
   0x4   :  { %16 = vsyncpa [#allocation9], 0  ;;  %s2920_s18 = smov 0   ;;  %s2922_s19 = smov 0  }
   0x5   :  { %s2924_s20 = smov 0   ;;  %s2926_s21 = smov 0  }
   0x6   :  { %s2928_s22 = smov 0   ;;  %s2930_s23 = smov 0  }
   0x7 LB: > { %s3743_s24 = sadd.s32 4294967295, %s2878_s23   ;;  %p56_p0 = scmp.ne.s32.totalorder %s2862_s19, %s2858_s18  ;;  %s2878_s23 = sphi %s2930_s23, %s22_s23   ;;  %s2874_s22 = sphi %s2928_s22, %s3759_s22   ;;  %s2870_s21 = sphi %s2926_s21, %s3758_s21   ;;  %s2866_s20 = sphi %s2924_s20, %s3757_s20   ;;  %s2862_s19 = sphi %s2922_s19, %s3756_s19   ;;  %s2858_s18 = sphi %s2920_s18, %s3755_s18  }
   0x8   : > { %p2952_p1 = scmp.eq.s32.totalorder %s3743_s24, 0  ;;  %p1894_p2 = scmp.ge.s32.totalorder %s2878_s23, 1 }
   0x9   : > { %p182_p3 = scmp.lt.s32.totalorder %s2878_s23, 3  ;;  %s2880_s28 = smov [#allocation7]  }
   0xa   : > { %s3744_s25 = scalar_select %p2952_p1, 1, 0 }
   0xb   : > { %p2960_p4 = por %p2952_p1, %p56_p0  ;;  %p2964_p5 = pnand %p1894_p2, %p182_p3 }
   0xc   : > { %s195_s29 = sshll.u32 %s2880_s28, 4  ;;  %s2881_s30 = smov [#allocation8]   ;;  %s196_s29 = int_to_ptr.vmem [resolvable:$true] %s195_s29 }
   0xd   : > { %s3745_s26 = scalar_select %p2960_p4, 1, 0 }
   0xe   : > { %s3746_s27 = scalar_select %p2964_p5, 1, 0 }
   0xf   : > { %p2592_p6 = pneg %p2964_p5  ;;  %s205_s6 = sshll.u32 %s2881_s30, 4  ;;  %s2976_s6 = int_to_ptr.vmem [resolvable:$true] %s205_s6 }
  0x10   : > { %s2882_s8 = smov [#allocation10]   ;;  %s2672_s12 = scalar_lea.hbm %s3735_s2, 64 }
  0x11   : > { %p2972_p7 = pnand %p2592_p6, %p2952_p1  ;;  %s2978_s9 = sshll.u32 %s2882_s8, 4  ;;  %s220_s9 = int_to_ptr.vmem [resolvable:$true] %s2978_s9 }
  0x12   : > { %p2673_p8 = scmp.ne.s32.totalorder %s3735_s2, %s2672_s12  ;;  %p2679_p12 = scmp.lt.u32.totalorder %s2672_s12, %s3735_s2 }
  0x13   : > { %p2988_p9 = pneg %p2972_p7 }
  0x15   : > { %p2675_p10 = pnand %p2988_p9, %p2673_p8 }
  0x17   : > { %p2676_p11 = pneg %p2675_p10 }
  0x19   : > { %p2681_p13 = pnand %p2679_p12, %p2676_p11 }
  0x1b   : > { %2684 = shalt.err (!%p2681_p13)
}
  0x1c   : > { %s2685_s18 = scalar_lea.vmem %s196_s29, 64  ;;  %p2693_p6 = scmp.lt.s32.totalorder %s196_s29, %s196_s29 }
  0x1d   : > { %p2686_p0 = scmp.ne.s32.totalorder %s196_s29, %s2685_s18  ;;  %p2694_p1 = scmp.lt.s32.totalorder %s2685_s18, %s2685_s18 }
  0x1f   : > { %p2688_p2 = pnand %p2686_p0, %p2988_p9  ;;  %p2695_p4 = por %p2694_p1, %p2693_p6 }
  0x21   : > { %p2689_p3 = pneg %p2688_p2 }
  0x23   : > { %p2696_p5 = pnand %p2695_p4, %p2689_p3 }
  0x25   : > { %2699 = shalt.err (!%p2696_p5)
}
  0x26   : > { %2595 = dma.hbm_to_vmem [thread:$0]  (!%p2972_p7), %s3735_s2, 64, %s196_s29, [#allocation6]  }
  0x27   : > { %s2700_s11 = scalar_lea.hbm %s3736_s3, 16384 }
  0x28   : > { %p2701_p8 = scmp.ne.s32.totalorder %s3736_s3, %s2700_s11  ;;  %p2707_p4 = scmp.lt.u32.totalorder %s2700_s11, %s3736_s3 }
  0x2a   : > { %p2703_p10 = pnand %p2701_p8, %p2988_p9 }
  0x2c   : > { %p2704_p1 = pneg %p2703_p10 }
  0x2e   : > { %p2709_p5 = pnand %p2707_p4, %p2704_p1 }
  0x30   : > { %2712 = shalt.err (!%p2709_p5)
}
  0x31   : > { %s2713_s29 = scalar_lea.vmem %s2976_s6, 16384  ;;  %p2721_p0 = scmp.lt.s32.totalorder %s2976_s6, %s2976_s6 }
  0x32   : > { %p2714_p11 = scmp.ne.s32.totalorder %s2976_s6, %s2713_s29  ;;  %p2722_p2 = scmp.lt.s32.totalorder %s2713_s29, %s2713_s29 }
  0x34   : > { %p2716_p12 = pnand %p2714_p11, %p2988_p9  ;;  %p2723_p3 = por %p2722_p2, %p2721_p0 }
  0x36   : > { %p2717_p13 = pneg %p2716_p12 }
  0x38   : > { %p2724_p6 = pnand %p2723_p3, %p2717_p13 }
  0x3a   : > { %2727 = shalt.err (!%p2724_p6)
}
  0x3b   : > { %s2883_s17 = smov 256   ;;  %s2884_s18 = smov 16  }
  0x3c   : > { %2598 = dma.hbm_to_vmem [thread:$0]  (!%p2972_p7), %s3736_s3, 16384, %s2976_s6, [#allocation9], %s2883_s17, %s2883_s17, %s2884_s18  }
  0x3d   : > { %s2728_s11 = scalar_lea.hbm %s3737_s4, 32 }
  0x3e   : > { %p2729_p8 = scmp.ne.s32.totalorder %s3737_s4, %s2728_s11  ;;  %p2735_p4 = scmp.lt.u32.totalorder %s2728_s11, %s3737_s4 }
  0x40   : > { %p2731_p10 = pnand %p2729_p8, %p2988_p9 }
  0x42   : > { %p2732_p1 = pneg %p2731_p10 }
  0x44   : > { %p2737_p5 = pnand %p2735_p4, %p2732_p1 }
  0x46   : > { %2740 = shalt.err (!%p2737_p5)
}
  0x47   : > { %s2741_s29 = scalar_lea.vmem %s220_s9, 32  ;;  %p2749_p0 = scmp.lt.s32.totalorder %s220_s9, %s220_s9 }
  0x48   : > { %p2742_p11 = scmp.ne.s32.totalorder %s220_s9, %s2741_s29  ;;  %p2750_p2 = scmp.lt.s32.totalorder %s2741_s29, %s2741_s29 }
  0x4a   : > { %p2744_p12 = pnand %p2742_p11, %p2988_p9  ;;  %p2751_p3 = por %p2750_p2, %p2749_p0 }
  0x4c   : > { %p2745_p13 = pneg %p2744_p12 }
  0x4e   : > { %p2752_p6 = pnand %p2751_p3, %p2745_p13 }
  0x50   : > { %2755 = shalt.err (!%p2752_p6)
}
  0x51   : > { %2601 = dma.hbm_to_vmem [thread:$0]  (!%p2972_p7), %s3737_s4, 32, %s220_s9, [#allocation9]  }
  0x52   : > { %s43_s15 = sadd.s32 1, %s2866_s20  ;;  %s31_s18 = sadd.s32 1, %s2874_s22 }
  0x53   : > { %p50_p9 = scmp.ne.s32.totalorder %s2866_s20, %s2862_s19  ;;  %p32_p8 = scmp.ge.s32.totalorder %s31_s18, 2 }
  0x54   : > { %p51_p10 = scmp.eq.s32.totalorder %s2878_s23, 0  ;;  %p2612_p1 = scmp.lt.s32.totalorder %s2878_s23, 2 }
  0x55   : > { %s3053_s7 = sand.u32 1, %s2866_s20   ;;  %s3761_s18 = smov (%p32_p8, %s31_s18), 0 }
  0x56   : > { %p52_p4 = por %p51_p10, %p50_p9  ;;  %s39_s28 = ssub.s32 %s2874_s22, %s3761_s18 }
  0x57   : > { %s1899_s9 = sshll.u32 %s3053_s7, 6  ;;  %p41_p7 = scmp.eq.s32.totalorder %s39_s28, 0 }
  0x58   : > { %s1917_s30 = sshll.u32 %s2874_s22, 10  ;;  %s234_s8 = scalar_lea.vmem [#allocation3], %s1899_s9 }
  0x59   : > { %s244_s10 = sshll.u32 %s234_s8, 4  ;;  %s3067_s14 = scalar_lea.hbm %s3733_s0, %s1917_s30  ;;  %s3069_s10 = int_to_ptr.vmem [resolvable:$true] %s244_s10 }
  0x5a   : > { %s3062_s11 = scalar_select %p41_p7, %s2866_s20, %s43_s15  }
  0x5b   : > { %p3073_p5 = pnand %p2612_p1, %p52_p4  ;;  %s1902_s29 = sshll.u32 %s3053_s7, 12 }
  0x5c   : > { %s1919_s6 = sshll.u32 %s2874_s22, 16  ;;  %s3079_s17 = scalar_lea.vmem [#allocation5], %s1902_s29 }
  0x5d   : > { %s263_s15 = sshll.u32 %s3079_s17, 4  ;;  %s231_s28 = scalar_lea.sflag [#allocation4], %s3053_s7  ;;  %s3110_s15 = int_to_ptr.vmem [resolvable:$true] %s263_s15 }
  0x5e   : > { %s2756_s9 = scalar_lea.hbm %s3067_s14, 1024  ;;  %p2758_p12 = pneg %p3073_p5 }
  0x5f   : > { %p2757_p11 = scmp.ne.s32.totalorder %s3067_s14, %s2756_s9  ;;  %s2761_s12 = scalar_lea.hbm %s3733_s0, 2048 }
  0x60   : > { %p2762_p2 = scmp.lt.u32.totalorder %s3067_s14, %s3733_s0  ;;  %p2763_p3 = scmp.lt.u32.totalorder %s2761_s12, %s2756_s9 }
  0x61   : > { %p2759_p13 = pnand %p2758_p12, %p2757_p11  ;;  %p2765_p9 = scmp.lt.u32.totalorder %s2756_s9, %s3067_s14 }
  0x62   : > { %p2764_p6 = por %p2763_p3, %p2762_p2 }
  0x63   : > { %p2760_p0 = pneg %p2759_p13 }
  0x64   : > { %p2766_p8 = por %p2765_p9, %p2764_p6 }
  0x66   : > { %p2767_p10 = pnand %p2766_p8, %p2760_p0 }
  0x68   : > { %2770 = shalt.err (!%p2767_p10)
}
  0x69   : > { %s2771_s7 = scalar_lea.vmem %s3069_s10, 1024  ;;  %s2885_s29 = smov [#allocation3]  }
  0x6a   : > { %p2772_p1 = scmp.ne.s32.totalorder %s3069_s10, %s2771_s7  ;;  %s2776_s30 = sshll.u32 %s2885_s29, 4  ;;  %s2777_s30 = int_to_ptr.vmem [resolvable:$false] %s2776_s30 }
  0x6b   : > { %s2778_s24 = scalar_lea.vmem %s2777_s30, 2048  ;;  %p2779_p11 = scmp.lt.s32.totalorder %s3069_s10, %s2777_s30 }
  0x6c   : > { %p2774_p4 = pnand %p2772_p1, %p2758_p12  ;;  %p2780_p13 = scmp.lt.s32.totalorder %s2778_s24, %s2771_s7 }
  0x6e   : > { %p2775_p7 = pneg %p2774_p4  ;;  %p2781_p2 = por %p2780_p13, %p2779_p11 }
  0x70   : > { %p2782_p3 = pnand %p2781_p2, %p2775_p7 }
  0x72   : > { %2785 = shalt.err (!%p2782_p3)
}
  0x73   : > { %2605 = dma.hbm_to_vmem [thread:$0]  (!%p3073_p5), %s3067_s14, 1024, %s3069_s10, %s231_s28  }
  0x74   : > { %s251_s9 = sand.u32 1, %s2878_s23   ;;  %s3118_s13 = scalar_lea.hbm %s3734_s1, %s1919_s6 }
  0x75   : > { %s3120_s7 = scalar_lea.sflag [#allocation6], %s251_s9  ;;  %s2786_s29 = scalar_lea.hbm %s3118_s13, 65536 }
  0x76   : > { %p2787_p0 = scmp.ne.s32.totalorder %s3118_s13, %s2786_s29  ;;  %s2791_s17 = scalar_lea.hbm %s3734_s1, 131072 }
  0x77   : > { %p2792_p8 = scmp.lt.u32.totalorder %s3118_s13, %s3734_s1  ;;  %p2793_p10 = scmp.lt.u32.totalorder %s2791_s17, %s2786_s29 }
  0x78   : > { %p2789_p6 = pnand %p2787_p0, %p2758_p12  ;;  %p2795_p4 = scmp.lt.u32.totalorder %s2786_s29, %s3118_s13 }
  0x79   : > { %p2794_p1 = por %p2793_p10, %p2792_p8 }
  0x7a   : > { %p2790_p9 = pneg %p2789_p6 }
  0x7b   : > { %p2796_p7 = por %p2795_p4, %p2794_p1 }
  0x7d   : > { %p2797_p11 = pnand %p2796_p7, %p2790_p9 }
  0x7f   : > { %2800 = shalt.err (!%p2797_p11)
}
  0x80   : > { %s2801_s6 = scalar_lea.vmem %s3110_s15, 65536  ;;  %s2886_s24 = smov [#allocation5]  }
  0x81   : > { %p2802_p13 = scmp.ne.s32.totalorder %s3110_s15, %s2801_s6  ;;  %s2806_s9 = sshll.u32 %s2886_s24, 4  ;;  %s2807_s9 = int_to_ptr.vmem [resolvable:$false] %s2806_s9 }
  0x82   : > { %s2808_s8 = scalar_lea.vmem %s2807_s9, 131072  ;;  %p2809_p0 = scmp.lt.s32.totalorder %s3110_s15, %s2807_s9 }
  0x83   : > { %p2804_p2 = pnand %p2802_p13, %p2758_p12  ;;  %p2810_p6 = scmp.lt.s32.totalorder %s2808_s8, %s2801_s6 }
  0x85   : > { %p2805_p3 = pneg %p2804_p2  ;;  %p2811_p8 = por %p2810_p6, %p2809_p0 }
  0x87   : > { %p2812_p10 = pnand %p2811_p8, %p2805_p3 }
  0x89   : > { %2815 = shalt.err (!%p2812_p10)
}
  0x8a   : > { %s2887_s12 = smov 512   ;;  %s2888_s29 = smov 32  }
  0x8b   : > { %2608 = dma.hbm_to_vmem [thread:$0]  (!%p3073_p5), %s3118_s13, 65536, %s3110_s15, %s3120_s7, %s2887_s12, %s2887_s12, %s2888_s29  }
  0x8c   : > { %p3750_p12 = scmp.ne.s32.totalorder %s3746_s27, 0 }
  0x8d   : > { %s277_s10 = sand.u32 (!%p3750_p12), 1, %s2862_s19   ;;  %p3751_p9 = scmp.ne.s32.totalorder (!%p3750_p12), %s3745_s26, 0 }
  0x8e   : > { %275 = sbr.rel (%p3750_p12) target bundleno = 909 (0x38d), region = 40  ;;  %s1907_s14 = sshll.u32 (!%p3750_p12), %s277_s10, 6 }
  0x8f   : > { %s278_s17 = scalar_lea.sflag (!%p3750_p12), [#allocation4], %s277_s10  ;;  %s3149_s28 = scalar_lea.vmem (!%p3750_p12), [#allocation3], %s1907_s14 }
  0x95   : > { %2841 = dma.done.wait (%p3751_p9), %s278_s17, 1024  }
  0x96   : > { %2843 = vsyncadd (%p3751_p9), %s278_s17, 4294966272  ;;  %s3752_s30 = sadd.s32 4294967295, %s2878_s23   ;;  %s1908_s15 = sshll.u32 %s277_s10, 12 }
  0x97   : > { %s286_s16 = sand.u32 1, %s3752_s30   ;;  %s3157_s27 = scalar_lea.vmem [#allocation5], %s1908_s15 }
  0x98   : > { %s287_s13 = scalar_lea.sflag [#allocation6], %s286_s16 }
  0x99   : > { %2845 = dma.done.wait (%p3751_p9), %s287_s13, 65536  }
  0x9a   : > { %2847 = vsyncadd (%p3751_p9), %s287_s13, 4294901760  ;;  %p3753_p5 = scmp.ne.s32.totalorder %s3744_s25, 0 }
  0x9c   : > { %2849 = dma.done.wait (%p3753_p5), [#allocation6], 64  }
  0x9d   : > { %2851 = vsyncadd (%p3753_p5), [#allocation6], 4294967232 }
  0x9e   : > { %2853 = dma.done.wait (%p3753_p5), [#allocation9], 16416  }
  0x9f   : > { %2855 = vsyncadd (%p3753_p5), [#allocation9], 4294950880  ;;  %p1912_p1 = scmp.ne.s32.totalorder %s2870_s21, 0 }
  0xa0   : > { %v2889_v0 = vmov (!%p1912_p1), 0.0  }
  0xa1   : > { %344 = sbr.rel (%p1912_p1) target bundleno = 168 (0xa8), region = 64  ;;  %345 = vst [vmem:[#allocation2] sm:$0xff] (!%p1912_p1), %v2889_v0  ;;  %346 = vst [vmem:[#allocation2 + $0x8] sm:$0xff] (!%p1912_p1), %v2889_v0 }
  0xa2   : > { %347 = vst [vmem:[#allocation2 + $0x10] sm:$0xff] (!%p1912_p1), %v2889_v0  ;;  %348 = vst [vmem:[#allocation2 + $0x18] sm:$0xff] (!%p1912_p1), %v2889_v0 }
  0xa8 PF: > { %v362_v1 = vld [vmem:[%s3157_s27 + $0x8] sm:$0xff]  ;;  %v364_v3 = vld [vmem:[%s3157_s27 + $0x18] sm:$0xff]  ;;  %v361_v6 = vld [vmem:[%s3157_s27] sm:$0xff]  ;;  %p1913_p4 = scmp.ne.s32.totalorder %s2870_s21, 1 }
  0xa9   : > { %v366_v2 = vld [vmem:[%s3157_s27 + $0x28] sm:$0xff]  ;;  %v368_v5 = vld [vmem:[%s3157_s27 + $0x38] sm:$0xff]  ;;  %v365_v7 = vld [vmem:[%s3157_s27 + $0x20] sm:$0xff] }
  0xaa   : > { %v1920_v4 = vpack.c.bf16 %v366_v2, %v362_v1  ;;  %v2176_v8 = vpack.c.bf16 %v368_v5, %v364_v3  ;;  %v1922_v9 = vpack.c.bf16 %v365_v7, %v361_v6  ;;  %v363_v10 = vld [vmem:[%s3157_s27 + $0x10] sm:$0xff]  ;;  %v370_v12 = vld [vmem:[%s3157_s27 + $0x48] sm:$0xff]  ;;  %v372_v15 = vld [vmem:[%s3157_s27 + $0x58] sm:$0xff] }
  0xab   : > { %v367_v11 = vld [vmem:[%s3157_s27 + $0x30] sm:$0xff]  ;;  %v374_v14 = vld [vmem:[%s3157_s27 + $0x68] sm:$0xff]  ;;  %v376_v16 = vld [vmem:[%s3157_s27 + $0x78] sm:$0xff] }
  0xac   : > { %1921 = vmatprep.subr.bf16.mxu0 %v1920_v4  ;;  %v2178_v13 = vpack.c.bf16 %v367_v11, %v363_v10  ;;  %2177 = vmatprep.subr.bf16.mxu1 %v2176_v8  ;;  %v1924_v17 = vpack.c.bf16 %v374_v14, %v370_v12  ;;  %v2180_v18 = vpack.c.bf16 %v376_v16, %v372_v15  ;;  %v369_v19 = vld [vmem:[%s3157_s27 + $0x40] sm:$0xff]  ;;  %v371_v21 = vld [vmem:[%s3157_s27 + $0x50] sm:$0xff]  ;;  %v378_v24 = vld [vmem:[%s3157_s27 + $0x88] sm:$0xff] }
  0xad   : > { %1923 = vmatpush1.bf16.msra.mxu0 %v1922_v9  ;;  %v373_v20 = vld [vmem:[%s3157_s27 + $0x60] sm:$0xff]  ;;  %v375_v23 = vld [vmem:[%s3157_s27 + $0x70] sm:$0xff]  ;;  %v382_v25 = vld [vmem:[%s3157_s27 + $0xa8] sm:$0xff] }
  0xae   : > { %2179 = vmatpush1.bf16.msra.mxu1 %v2178_v13  ;;  %v1926_v22 = vpack.c.bf16 %v373_v20, %v369_v19  ;;  %1925 = vmatprep.subr.bf16.mxu0 %v1924_v17  ;;  %v2182_v26 = vpack.c.bf16 %v375_v23, %v371_v21  ;;  %v1928_v27 = vpack.c.bf16 %v382_v25, %v378_v24  ;;  %v380_v28 = vld [vmem:[%s3157_s27 + $0x98] sm:$0xff]  ;;  %v377_v30 = vld [vmem:[%s3157_s27 + $0x80] sm:$0xff]  ;;  %v379_v33 = vld [vmem:[%s3157_s27 + $0x90] sm:$0xff] }
  0xaf   : > { %2181 = vmatprep.subr.bf16.mxu1 %v2180_v18  ;;  %v384_v29 = vld [vmem:[%s3157_s27 + $0xb8] sm:$0xff]  ;;  %v381_v32 = vld [vmem:[%s3157_s27 + $0xa0] sm:$0xff]  ;;  %v383_v34 = vld [vmem:[%s3157_s27 + $0xb0] sm:$0xff] }
  0xb0   : > { %v2184_v31 = vpack.c.bf16 %v384_v29, %v380_v28  ;;  %v1930_v35 = vpack.c.bf16 %v381_v32, %v377_v30  ;;  %v386_v36 = vld [vmem:[%s3157_s27 + $0xc8] sm:$0xff]  ;;  %v388_v38 = vld [vmem:[%s3157_s27 + $0xd8] sm:$0xff]  ;;  %v2186_v39 = vpack.c.bf16 %v383_v34, %v379_v33  ;;  %v385_v42 = vld [vmem:[%s3157_s27 + $0xc0] sm:$0xff] }
  0xb1   : > { %1927 = vmatpush1.bf16.msra.mxu0 %v1926_v22  ;;  %v390_v37 = vld [vmem:[%s3157_s27 + $0xe8] sm:$0xff]  ;;  %v392_v41 = vld [vmem:[%s3157_s27 + $0xf8] sm:$0xff]  ;;  %v389_v43 = vld [vmem:[%s3157_s27 + $0xe0] sm:$0xff] }
  0xb2   : > { %2183 = vmatpush1.bf16.msra.mxu1 %v2182_v26  ;;  %1929 = vmatprep.subr.bf16.mxu0 %v1928_v27  ;;  %v1932_v40 = vpack.c.bf16 %v390_v37, %v386_v36  ;;  %v2188_v44 = vpack.c.bf16 %v392_v41, %v388_v38  ;;  %v387_v45 = vld [vmem:[%s3157_s27 + $0xd0] sm:$0xff]  ;;  %v394_v47 = vld [vmem:[%s3157_s27 + $0x108] sm:$0xff]  ;;  %v396_v49 = vld [vmem:[%s3157_s27 + $0x118] sm:$0xff]  ;;  %v1934_v51 = vpack.c.bf16 %v389_v43, %v385_v42 }
  0xb3   : > { %2185 = vmatprep.subr.bf16.mxu1 %v2184_v31  ;;  %v391_v46 = vld [vmem:[%s3157_s27 + $0xf0] sm:$0xff]  ;;  %v398_v48 = vld [vmem:[%s3157_s27 + $0x128] sm:$0xff]  ;;  %v400_v50 = vld [vmem:[%s3157_s27 + $0x138] sm:$0xff] }
  0xb4   : > { %v2190_v52 = vpack.c.bf16 %v391_v46, %v387_v45  ;;  %v1936_v53 = vpack.c.bf16 %v398_v48, %v394_v47  ;;  %v393_v54 = vld [vmem:[%s3157_s27 + $0x100] sm:$0xff]  ;;  %v395_v56 = vld [vmem:[%s3157_s27 + $0x110] sm:$0xff]  ;;  %v2192_v57 = vpack.c.bf16 %v400_v50, %v396_v49  ;;  %v402_v59 = vld [vmem:[%s3157_s27 + $0x148] sm:$0xff] }
  0xb5   : > { %1931 = vmatpush1.bf16.msra.mxu0 %v1930_v35  ;;  %v397_v55 = vld [vmem:[%s3157_s27 + $0x120] sm:$0xff]  ;;  %v399_v58 = vld [vmem:[%s3157_s27 + $0x130] sm:$0xff]  ;;  %v406_v60 = vld [vmem:[%s3157_s27 + $0x168] sm:$0xff] }
  0xb6   : > { %2187 = vmatpush1.bf16.msra.mxu1 %v2186_v39  ;;  %1933 = vmatprep.subr.bf16.mxu0 %v1932_v40  ;;  %v404_v61 = vld [vmem:[%s3157_s27 + $0x158] sm:$0xff]  ;;  %v1938_v63 = vpack.c.bf16 %v397_v55, %v393_v54  ;;  %v2194_v0 = vpack.c.bf16 %v399_v58, %v395_v56  ;;  %v1940_v1 = vpack.c.bf16 %v406_v60, %v402_v59  ;;  %v401_v2 = vld [vmem:[%s3157_s27 + $0x140] sm:$0xff]  ;;  %v403_v4 = vld [vmem:[%s3157_s27 + $0x150] sm:$0xff] }
  0xb7   : > { %2189 = vmatprep.subr.bf16.mxu1 %v2188_v44  ;;  %v408_v62 = vld [vmem:[%s3157_s27 + $0x178] sm:$0xff]  ;;  %v405_v3 = vld [vmem:[%s3157_s27 + $0x160] sm:$0xff]  ;;  %v407_v6 = vld [vmem:[%s3157_s27 + $0x170] sm:$0xff] }
  0xb8   : > { %v2196_v5 = vpack.c.bf16 %v408_v62, %v404_v61  ;;  %v410_v7 = vld [vmem:[%s3157_s27 + $0x188] sm:$0xff]  ;;  %v412_v9 = vld [vmem:[%s3157_s27 + $0x198] sm:$0xff]  ;;  %v1942_v11 = vpack.c.bf16 %v405_v3, %v401_v2  ;;  %v2198_v12 = vpack.c.bf16 %v407_v6, %v403_v4  ;;  %v409_v14 = vld [vmem:[%s3157_s27 + $0x180] sm:$0xff] }
  0xb9   : > { %1935 = vmatpush1.bf16.msra.mxu0 %v1934_v51  ;;  %v414_v8 = vld [vmem:[%s3157_s27 + $0x1a8] sm:$0xff]  ;;  %v416_v10 = vld [vmem:[%s3157_s27 + $0x1b8] sm:$0xff]  ;;  %v413_v15 = vld [vmem:[%s3157_s27 + $0x1a0] sm:$0xff] }
  0xba   : > { %2191 = vmatpush1.bf16.msra.mxu1 %v2190_v52  ;;  %1937 = vmatprep.subr.bf16.mxu0 %v1936_v53  ;;  %v1944_v13 = vpack.c.bf16 %v414_v8, %v410_v7  ;;  %v411_v16 = vld [vmem:[%s3157_s27 + $0x190] sm:$0xff]  ;;  %v2200_v17 = vpack.c.bf16 %v416_v10, %v412_v9  ;;  %v418_v19 = vld [vmem:[%s3157_s27 + $0x1c8] sm:$0xff]  ;;  %v420_v21 = vld [vmem:[%s3157_s27 + $0x1d8] sm:$0xff]  ;;  %v1946_v23 = vpack.c.bf16 %v413_v15, %v409_v14 }
  0xbb   : > { %2193 = vmatprep.subr.bf16.mxu1 %v2192_v57  ;;  %v415_v18 = vld [vmem:[%s3157_s27 + $0x1b0] sm:$0xff]  ;;  %v422_v20 = vld [vmem:[%s3157_s27 + $0x1e8] sm:$0xff]  ;;  %v424_v22 = vld [vmem:[%s3157_s27 + $0x1f8] sm:$0xff] }
  0xbc   : > { %v2202_v24 = vpack.c.bf16 %v415_v18, %v411_v16  ;;  %v1948_v25 = vpack.c.bf16 %v422_v20, %v418_v19  ;;  %v417_v26 = vld [vmem:[%s3157_s27 + $0x1c0] sm:$0xff]  ;;  %v419_v28 = vld [vmem:[%s3157_s27 + $0x1d0] sm:$0xff]  ;;  %v2204_v29 = vpack.c.bf16 %v424_v22, %v420_v21  ;;  %v426_v31 = vld [vmem:[%s3157_s27 + $0x208] sm:$0xff] }
  0xbd   : > { %1939 = vmatpush1.bf16.msra.mxu0 %v1938_v63  ;;  %v421_v27 = vld [vmem:[%s3157_s27 + $0x1e0] sm:$0xff]  ;;  %v423_v30 = vld [vmem:[%s3157_s27 + $0x1f0] sm:$0xff]  ;;  %v430_v32 = vld [vmem:[%s3157_s27 + $0x228] sm:$0xff] }
  0xbe   : > { %2195 = vmatpush1.bf16.msra.mxu1 %v2194_v0  ;;  %1941 = vmatprep.subr.bf16.mxu0 %v1940_v1  ;;  %v428_v33 = vld [vmem:[%s3157_s27 + $0x218] sm:$0xff]  ;;  %v1950_v35 = vpack.c.bf16 %v421_v27, %v417_v26  ;;  %v2206_v36 = vpack.c.bf16 %v423_v30, %v419_v28  ;;  %v1952_v37 = vpack.c.bf16 %v430_v32, %v426_v31  ;;  %v425_v38 = vld [vmem:[%s3157_s27 + $0x200] sm:$0xff]  ;;  %v427_v40 = vld [vmem:[%s3157_s27 + $0x210] sm:$0xff] }
  0xbf   : > { %2197 = vmatprep.subr.bf16.mxu1 %v2196_v5  ;;  %v432_v34 = vld [vmem:[%s3157_s27 + $0x238] sm:$0xff]  ;;  %v429_v39 = vld [vmem:[%s3157_s27 + $0x220] sm:$0xff]  ;;  %v431_v42 = vld [vmem:[%s3157_s27 + $0x230] sm:$0xff] }
  0xc0   : > { %v2208_v41 = vpack.c.bf16 %v432_v34, %v428_v33  ;;  %v434_v43 = vld [vmem:[%s3157_s27 + $0x248] sm:$0xff]  ;;  %v436_v45 = vld [vmem:[%s3157_s27 + $0x258] sm:$0xff]  ;;  %v1954_v47 = vpack.c.bf16 %v429_v39, %v425_v38  ;;  %v2210_v48 = vpack.c.bf16 %v431_v42, %v427_v40  ;;  %v433_v50 = vld [vmem:[%s3157_s27 + $0x240] sm:$0xff] }
  0xc1   : > { %1943 = vmatpush1.bf16.msra.mxu0 %v1942_v11  ;;  %v438_v44 = vld [vmem:[%s3157_s27 + $0x268] sm:$0xff]  ;;  %v440_v46 = vld [vmem:[%s3157_s27 + $0x278] sm:$0xff]  ;;  %v437_v51 = vld [vmem:[%s3157_s27 + $0x260] sm:$0xff] }
  0xc2   : > { %2199 = vmatpush1.bf16.msra.mxu1 %v2198_v12  ;;  %1945 = vmatprep.subr.bf16.mxu0 %v1944_v13  ;;  %v1956_v49 = vpack.c.bf16 %v438_v44, %v434_v43  ;;  %v435_v52 = vld [vmem:[%s3157_s27 + $0x250] sm:$0xff]  ;;  %v2212_v53 = vpack.c.bf16 %v440_v46, %v436_v45  ;;  %v442_v55 = vld [vmem:[%s3157_s27 + $0x288] sm:$0xff]  ;;  %v444_v57 = vld [vmem:[%s3157_s27 + $0x298] sm:$0xff]  ;;  %v1958_v59 = vpack.c.bf16 %v437_v51, %v433_v50 }
  0xc3   : > { %2201 = vmatprep.subr.bf16.mxu1 %v2200_v17  ;;  %v439_v54 = vld [vmem:[%s3157_s27 + $0x270] sm:$0xff]  ;;  %v446_v56 = vld [vmem:[%s3157_s27 + $0x2a8] sm:$0xff]  ;;  %v448_v58 = vld [vmem:[%s3157_s27 + $0x2b8] sm:$0xff] }
  0xc4   : > { %v2214_v60 = vpack.c.bf16 %v439_v54, %v435_v52  ;;  %v1960_v61 = vpack.c.bf16 %v446_v56, %v442_v55  ;;  %v441_v62 = vld [vmem:[%s3157_s27 + $0x280] sm:$0xff]  ;;  %v443_v0 = vld [vmem:[%s3157_s27 + $0x290] sm:$0xff]  ;;  %v2216_v1 = vpack.c.bf16 %v448_v58, %v444_v57  ;;  %v450_v3 = vld [vmem:[%s3157_s27 + $0x2c8] sm:$0xff] }
  0xc5   : > { %1947 = vmatpush1.bf16.msra.mxu0 %v1946_v23  ;;  %v445_v63 = vld [vmem:[%s3157_s27 + $0x2a0] sm:$0xff]  ;;  %v447_v2 = vld [vmem:[%s3157_s27 + $0x2b0] sm:$0xff]  ;;  %v454_v4 = vld [vmem:[%s3157_s27 + $0x2e8] sm:$0xff] }
  0xc6   : > { %2203 = vmatpush1.bf16.msra.mxu1 %v2202_v24  ;;  %1949 = vmatprep.subr.bf16.mxu0 %v1948_v25  ;;  %v452_v5 = vld [vmem:[%s3157_s27 + $0x2d8] sm:$0xff]  ;;  %v1962_v7 = vpack.c.bf16 %v445_v63, %v441_v62  ;;  %v449_v8 = vld [vmem:[%s3157_s27 + $0x2c0] sm:$0xff]  ;;  %v2218_v9 = vpack.c.bf16 %v447_v2, %v443_v0  ;;  %v1964_v10 = vpack.c.bf16 %v454_v4, %v450_v3  ;;  %v451_v12 = vld [vmem:[%s3157_s27 + $0x2d0] sm:$0xff] }
  0xc7   : > { %2205 = vmatprep.subr.bf16.mxu1 %v2204_v29  ;;  %v456_v6 = vld [vmem:[%s3157_s27 + $0x2f8] sm:$0xff]  ;;  %v453_v11 = vld [vmem:[%s3157_s27 + $0x2e0] sm:$0xff]  ;;  %v455_v13 = vld [vmem:[%s3157_s27 + $0x2f0] sm:$0xff] }
  0xc8   : > { %v2220_v14 = vpack.c.bf16 %v456_v6, %v452_v5  ;;  %v458_v15 = vld [vmem:[%s3157_s27 + $0x308] sm:$0xff]  ;;  %v460_v18 = vld [vmem:[%s3157_s27 + $0x318] sm:$0xff]  ;;  %v1966_v20 = vpack.c.bf16 %v453_v11, %v449_v8  ;;  %v2222_v21 = vpack.c.bf16 %v455_v13, %v451_v12  ;;  %v457_v23 = vld [vmem:[%s3157_s27 + $0x300] sm:$0xff] }
  0xc9   : > { %1951 = vmatpush1.bf16.msra.mxu0 %v1950_v35  ;;  %v462_v16 = vld [vmem:[%s3157_s27 + $0x328] sm:$0xff]  ;;  %v464_v19 = vld [vmem:[%s3157_s27 + $0x338] sm:$0xff]  ;;  %v461_v24 = vld [vmem:[%s3157_s27 + $0x320] sm:$0xff] }
  0xca   : > { %2207 = vmatpush1.bf16.msra.mxu1 %v2206_v36  ;;  %1953 = vmatprep.subr.bf16.mxu0 %v1952_v37  ;;  %v354_v17 = vld [vmem:[%s3149_s28 + $0x8] sm:$0xff]  ;;  %v1968_v22 = vpack.c.bf16 %v462_v16, %v458_v15  ;;  %v459_v25 = vld [vmem:[%s3157_s27 + $0x310] sm:$0xff]  ;;  %v2224_v26 = vpack.c.bf16 %v464_v19, %v460_v18  ;;  %v468_v30 = vld [vmem:[%s3157_s27 + $0x358] sm:$0xff]  ;;  %v1970_v32 = vpack.c.bf16 %v461_v24, %v457_v23 }
  0xcb   : > { %2209 = vmatprep.subr.bf16.mxu1 %v2208_v41  ;;  %937 = vmatprep.mubr.f32.mxu0 %v354_v17  ;;  %v463_v27 = vld [vmem:[%s3157_s27 + $0x330] sm:$0xff]  ;;  %v466_v28 = vld [vmem:[%s3157_s27 + $0x348] sm:$0xff]  ;;  %v472_v31 = vld [vmem:[%s3157_s27 + $0x378] sm:$0xff] }
  0xcc   : > { %1221 = vmatprep.mubr.f32.mxu1 %v354_v17  ;;  %v470_v29 = vld [vmem:[%s3157_s27 + $0x368] sm:$0xff]  ;;  %v2226_v33 = vpack.c.bf16 %v463_v27, %v459_v25  ;;  %v465_v35 = vld [vmem:[%s3157_s27 + $0x340] sm:$0xff]  ;;  %v467_v37 = vld [vmem:[%s3157_s27 + $0x350] sm:$0xff]  ;;  %v2228_v38 = vpack.c.bf16 %v472_v31, %v468_v30 }
  0xcd   : > { %1955 = vmatpush1.bf16.msra.mxu0 %v1954_v47  ;;  %v1972_v34 = vpack.c.bf16 %v470_v29, %v466_v28  ;;  %v469_v36 = vld [vmem:[%s3157_s27 + $0x360] sm:$0xff]  ;;  %v471_v39 = vld [vmem:[%s3157_s27 + $0x370] sm:$0xff]  ;;  %v474_v40 = vld [vmem:[%s3157_s27 + $0x388] sm:$0xff] }
  0xce   : > { %2211 = vmatpush1.bf16.msra.mxu1 %v2210_v48  ;;  %1957 = vmatprep.subr.bf16.mxu0 %v1956_v49  ;;  %v478_v41 = vld [vmem:[%s3157_s27 + $0x3a8] sm:$0xff]  ;;  %v476_v42 = vld [vmem:[%s3157_s27 + $0x398] sm:$0xff]  ;;  %v1974_v44 = vpack.c.bf16 %v469_v36, %v465_v35  ;;  %v2230_v45 = vpack.c.bf16 %v471_v39, %v467_v37  ;;  %v473_v47 = vld [vmem:[%s3157_s27 + $0x380] sm:$0xff] }
  0xcf   : > { %2213 = vmatprep.subr.bf16.mxu1 %v2212_v53  ;;  %v480_v43 = vld [vmem:[%s3157_s27 + $0x3b8] sm:$0xff]  ;;  %v1976_v46 = vpack.c.bf16 %v478_v41, %v474_v40  ;;  %v477_v48 = vld [vmem:[%s3157_s27 + $0x3a0] sm:$0xff]  ;;  %v475_v49 = vld [vmem:[%s3157_s27 + $0x390] sm:$0xff] }
  0xd0   : > { %v2232_v50 = vpack.c.bf16 %v480_v43, %v476_v42  ;;  %v479_v51 = vld [vmem:[%s3157_s27 + $0x3b0] sm:$0xff]  ;;  %v482_v52 = vld [vmem:[%s3157_s27 + $0x3c8] sm:$0xff]  ;;  %v484_v54 = vld [vmem:[%s3157_s27 + $0x3d8] sm:$0xff]  ;;  %v1978_v56 = vpack.c.bf16 %v477_v48, %v473_v47 }
  0xd1   : > { %1959 = vmatpush1.bf16.msra.mxu0 %v1958_v59  ;;  %v486_v53 = vld [vmem:[%s3157_s27 + $0x3e8] sm:$0xff]  ;;  %v488_v55 = vld [vmem:[%s3157_s27 + $0x3f8] sm:$0xff]  ;;  %v2234_v57 = vpack.c.bf16 %v479_v51, %v475_v49  ;;  %v481_v59 = vld [vmem:[%s3157_s27 + $0x3c0] sm:$0xff] }
  0xd2   : > { %2215 = vmatpush1.bf16.msra.mxu1 %v2214_v60  ;;  %1961 = vmatprep.subr.bf16.mxu0 %v1960_v61  ;;  %v1980_v58 = vpack.c.bf16 %v486_v53, %v482_v52  ;;  %v485_v60 = vld [vmem:[%s3157_s27 + $0x3e0] sm:$0xff]  ;;  %v483_v61 = vld [vmem:[%s3157_s27 + $0x3d0] sm:$0xff]  ;;  %v2236_v62 = vpack.c.bf16 %v488_v55, %v484_v54  ;;  %v490_v0 = vld [vmem:[%s3157_s27 + $0x408] sm:$0xff] }
  0xd3   : > { %2217 = vmatprep.subr.bf16.mxu1 %v2216_v1  ;;  %v487_v63 = vld [vmem:[%s3157_s27 + $0x3f0] sm:$0xff]  ;;  %v494_v1 = vld [vmem:[%s3157_s27 + $0x428] sm:$0xff]  ;;  %v492_v2 = vld [vmem:[%s3157_s27 + $0x418] sm:$0xff]  ;;  %v1982_v4 = vpack.c.bf16 %v485_v60, %v481_v59 }
  0xd4   : > { %v496_v3 = vld [vmem:[%s3157_s27 + $0x438] sm:$0xff]  ;;  %v2238_v5 = vpack.c.bf16 %v487_v63, %v483_v61  ;;  %v1984_v6 = vpack.c.bf16 %v494_v1, %v490_v0  ;;  %v493_v8 = vld [vmem:[%s3157_s27 + $0x420] sm:$0xff]  ;;  %v495_v11 = vld [vmem:[%s3157_s27 + $0x430] sm:$0xff] }
  0xd5   : > { %1963 = vmatpush1.bf16.msra.mxu0 %v1962_v7  ;;  %v489_v7 = vld [vmem:[%s3157_s27 + $0x400] sm:$0xff]  ;;  %v498_v12 = vld [vmem:[%s3157_s27 + $0x448] sm:$0xff]  ;;  %v504_v15 = vld [vmem:[%s3157_s27 + $0x478] sm:$0xff] }
  0xd6   : > { %2219 = vmatpush1.bf16.msra.mxu1 %v2218_v9  ;;  %1965 = vmatprep.subr.bf16.mxu0 %v1964_v10  ;;  %v491_v9 = vld [vmem:[%s3157_s27 + $0x410] sm:$0xff]  ;;  %v2240_v10 = vpack.c.bf16 %v496_v3, %v492_v2  ;;  %v502_v13 = vld [vmem:[%s3157_s27 + $0x468] sm:$0xff]  ;;  %v353_v16 = vld [vmem:[%s3149_s28] sm:$0xff]  ;;  %v1986_v17 = vpack.c.bf16 %v493_v8, %v489_v7 }
  0xd7   : > { %2221 = vmatprep.subr.bf16.mxu1 %v2220_v14  ;;  %v500_v14 = vld [vmem:[%s3157_s27 + $0x458] sm:$0xff]  ;;  %v2242_v18 = vpack.c.bf16 %v495_v11, %v491_v9  ;;  %v1988_v19 = vpack.c.bf16 %v502_v13, %v498_v12  ;;  %v503_v24 = vld [vmem:[%s3157_s27 + $0x470] sm:$0xff]  ;;  %v506_v25 = vld [vmem:[%s3157_s27 + $0x488] sm:$0xff] }
  0xd8   : > { %v2244_v23 = vpack.c.bf16 %v504_v15, %v500_v14  ;;  %v508_v27 = vld [vmem:[%s3157_s27 + $0x498] sm:$0xff]  ;;  %v511_v36 = vld [vmem:[%s3157_s27 + $0x4b0] sm:$0xff]  ;;  %v514_v37 = vld [vmem:[%s3157_s27 + $0x4c8] sm:$0xff] }
  0xd9   : > { %1967 = vmatpush1.bf16.msra.mxu0 %v1966_v20  ;;  %v497_v20 = vld [vmem:[%s3157_s27 + $0x440] sm:$0xff]  ;;  %v512_v28 = vld [vmem:[%s3157_s27 + $0x4b8] sm:$0xff]  ;;  %v519_v48 = vld [vmem:[%s3157_s27 + $0x4f0] sm:$0xff] }
  0xda   : > { %2223 = vmatpush1.bf16.msra.mxu1 %v2222_v21  ;;  %1969 = vmatprep.subr.bf16.mxu0 %v1968_v22  ;;  %v501_v21 = vld [vmem:[%s3157_s27 + $0x460] sm:$0xff]  ;;  %v499_v22 = vld [vmem:[%s3157_s27 + $0x450] sm:$0xff]  ;;  %v2248_v35 = vpack.c.bf16 %v512_v28, %v508_v27  ;;  %v516_v39 = vld [vmem:[%s3157_s27 + $0x4d8] sm:$0xff] }
  0xdb   : > { %2225 = vmatprep.subr.bf16.mxu1 %v2224_v26  ;;  %v510_v26 = vld [vmem:[%s3157_s27 + $0x4a8] sm:$0xff]  ;;  %v1990_v29 = vpack.c.bf16 %v501_v21, %v497_v20  ;;  %v2246_v30 = vpack.c.bf16 %v503_v24, %v499_v22  ;;  %v520_v40 = vld [vmem:[%s3157_s27 + $0x4f8] sm:$0xff]  ;;  %v527_v60 = vld [vmem:[%s3157_s27 + $0x530] sm:$0xff] }
  0xdc   : > { %v1992_v31 = vpack.c.bf16 %v510_v26, %v506_v25  ;;  %v2252_v47 = vpack.c.bf16 %v520_v40, %v516_v39  ;;  %v522_v49 = vld [vmem:[%s3157_s27 + $0x508] sm:$0xff]  ;;  %v524_v51 = vld [vmem:[%s3157_s27 + $0x518] sm:$0xff]  ;;  %v535_v8 = vld [vmem:[%s3157_s27 + $0x570] sm:$0xff] }
  0xdd   : > { %1971 = vmatpush1.bf16.msra.mxu0 %v1970_v32  ;;  %v505_v32 = vld [vmem:[%s3157_s27 + $0x480] sm:$0xff]  ;;  %v528_v52 = vld [vmem:[%s3157_s27 + $0x538] sm:$0xff]  ;;  %v530_v61 = vld [vmem:[%s3157_s27 + $0x548] sm:$0xff] }
  0xde   : > { %2227 = vmatpush1.bf16.msra.mxu1 %v2226_v33  ;;  %1973 = vmatprep.subr.bf16.mxu0 %v1972_v34  ;;  %v509_v33 = vld [vmem:[%s3157_s27 + $0x4a0] sm:$0xff]  ;;  %v507_v34 = vld [vmem:[%s3157_s27 + $0x490] sm:$0xff]  ;;  %v2256_v59 = vpack.c.bf16 %v528_v52, %v524_v51  ;;  %v532_v63 = vld [vmem:[%s3157_s27 + $0x558] sm:$0xff] }
  0xdf   : > { %2229 = vmatprep.subr.bf16.mxu1 %v2228_v38  ;;  %v518_v38 = vld [vmem:[%s3157_s27 + $0x4e8] sm:$0xff]  ;;  %v1994_v41 = vpack.c.bf16 %v509_v33, %v505_v32  ;;  %v2250_v42 = vpack.c.bf16 %v511_v36, %v507_v34  ;;  %v536_v0 = vld [vmem:[%s3157_s27 + $0x578] sm:$0xff]  ;;  %v537_v14 = vld [vmem:[%s3157_s27 + $0x580] sm:$0xff] }
  0xe0   : > { %v1996_v43 = vpack.c.bf16 %v518_v38, %v514_v37  ;;  %v2260_v7 = vpack.c.bf16 %v536_v0, %v532_v63  ;;  %v538_v9 = vld [vmem:[%s3157_s27 + $0x588] sm:$0xff]  ;;  %v540_v11 = vld [vmem:[%s3157_s27 + $0x598] sm:$0xff]  ;;  %v551_v33 = vld [vmem:[%s3157_s27 + $0x5f0] sm:$0xff] }
  0xe1   : > { %1975 = vmatpush1.bf16.msra.mxu0 %v1974_v44  ;;  %v513_v44 = vld [vmem:[%s3157_s27 + $0x4c0] sm:$0xff]  ;;  %v544_v12 = vld [vmem:[%s3157_s27 + $0x5b8] sm:$0xff]  ;;  %v546_v21 = vld [vmem:[%s3157_s27 + $0x5c8] sm:$0xff] }
  0xe2   : > { %2231 = vmatpush1.bf16.msra.mxu1 %v2230_v45  ;;  %1977 = vmatprep.subr.bf16.mxu0 %v1976_v46  ;;  %v517_v45 = vld [vmem:[%s3157_s27 + $0x4e0] sm:$0xff]  ;;  %v515_v46 = vld [vmem:[%s3157_s27 + $0x4d0] sm:$0xff]  ;;  %v2264_v20 = vpack.c.bf16 %v544_v12, %v540_v11  ;;  %v550_v22 = vld [vmem:[%s3157_s27 + $0x5e8] sm:$0xff] }
  0xe3   : > { %2233 = vmatprep.subr.bf16.mxu1 %v2232_v50  ;;  %v526_v50 = vld [vmem:[%s3157_s27 + $0x528] sm:$0xff]  ;;  %v1998_v53 = vpack.c.bf16 %v517_v45, %v513_v44  ;;  %v2254_v54 = vpack.c.bf16 %v519_v48, %v515_v46  ;;  %v548_v24 = vld [vmem:[%s3157_s27 + $0x5d8] sm:$0xff]  ;;  %v2012_v28 = vpack.c.bf16 %v550_v22, %v546_v21  ;;  %v559_v45 = vld [vmem:[%s3157_s27 + $0x630] sm:$0xff] }
  0xe4   : > { %v2000_v55 = vpack.c.bf16 %v526_v50, %v522_v49  ;;  %v552_v25 = vld [vmem:[%s3157_s27 + $0x5f8] sm:$0xff]  ;;  %v554_v34 = vld [vmem:[%s3157_s27 + $0x608] sm:$0xff] }
  0xe5   : > { %1979 = vmatpush1.bf16.msra.mxu0 %v1978_v56  ;;  %v521_v56 = vld [vmem:[%s3157_s27 + $0x500] sm:$0xff]  ;;  %v2268_v32 = vpack.c.bf16 %v552_v25, %v548_v24  ;;  %v556_v36 = vld [vmem:[%s3157_s27 + $0x618] sm:$0xff]  ;;  %v562_v46 = vld [vmem:[%s3157_s27 + $0x648] sm:$0xff] }
  0xe6   : > { %2235 = vmatpush1.bf16.msra.mxu1 %v2234_v57  ;;  %1981 = vmatprep.subr.bf16.mxu0 %v1980_v58  ;;  %v525_v57 = vld [vmem:[%s3157_s27 + $0x520] sm:$0xff]  ;;  %v523_v58 = vld [vmem:[%s3157_s27 + $0x510] sm:$0xff]  ;;  %v560_v37 = vld [vmem:[%s3157_s27 + $0x638] sm:$0xff] }
  0xe7   : > { %2237 = vmatprep.subr.bf16.mxu1 %v2236_v62  ;;  %v534_v62 = vld [vmem:[%s3157_s27 + $0x568] sm:$0xff]  ;;  %v2002_v1 = vpack.c.bf16 %v525_v57, %v521_v56  ;;  %v2258_v2 = vpack.c.bf16 %v527_v60, %v523_v58  ;;  %v2272_v44 = vpack.c.bf16 %v560_v37, %v556_v36  ;;  %v564_v48 = vld [vmem:[%s3157_s27 + $0x658] sm:$0xff]  ;;  %v567_v57 = vld [vmem:[%s3157_s27 + $0x670] sm:$0xff] }
  0xe8   : > { %v2004_v3 = vpack.c.bf16 %v534_v62, %v530_v61  ;;  %v568_v49 = vld [vmem:[%s3157_s27 + $0x678] sm:$0xff]  ;;  %v570_v58 = vld [vmem:[%s3157_s27 + $0x688] sm:$0xff]  ;;  %v585_v25 = vld [vmem:[%s3157_s27 + $0x700] sm:$0xff] }
  0xe9   : > { %1983 = vmatpush1.bf16.msra.mxu0 %v1982_v4  ;;  %v529_v4 = vld [vmem:[%s3157_s27 + $0x540] sm:$0xff]  ;;  %v2276_v56 = vpack.c.bf16 %v568_v49, %v564_v48  ;;  %v572_v60 = vld [vmem:[%s3157_s27 + $0x698] sm:$0xff] }
  0xea   : > { %2239 = vmatpush1.bf16.msra.mxu1 %v2238_v5  ;;  %1985 = vmatprep.subr.bf16.mxu0 %v1984_v6  ;;  %v533_v5 = vld [vmem:[%s3157_s27 + $0x560] sm:$0xff]  ;;  %v531_v6 = vld [vmem:[%s3157_s27 + $0x550] sm:$0xff]  ;;  %v576_v61 = vld [vmem:[%s3157_s27 + $0x6b8] sm:$0xff] }
  0xeb   : > { %2241 = vmatprep.subr.bf16.mxu1 %v2240_v10  ;;  %v542_v10 = vld [vmem:[%s3157_s27 + $0x5a8] sm:$0xff]  ;;  %v2006_v13 = vpack.c.bf16 %v533_v5, %v529_v4  ;;  %v2262_v15 = vpack.c.bf16 %v535_v8, %v531_v6  ;;  %v2280_v4 = vpack.c.bf16 %v576_v61, %v572_v60  ;;  %v575_v5 = vld [vmem:[%s3157_s27 + $0x6b0] sm:$0xff]  ;;  %v580_v8 = vld [vmem:[%s3157_s27 + $0x6d8] sm:$0xff] }
  0xec   : > { %938 = vmatmul.mubr.f32.vlgmr.msra.gmra.mrb[0].mxu0 %v353_v16  ;;  %v578_v6 = vld [vmem:[%s3157_s27 + $0x6c8] sm:$0xff]  ;;  %v592_v21 = vld [vmem:[%s3157_s27 + $0x738] sm:$0xff]  ;;  %v593_v37 = vld [vmem:[%s3157_s27 + $0x740] sm:$0xff] }
  0xed   : > { %1987 = vmatpush1.bf16.msra.mxu0 %v1986_v17  ;;  %1222 = vmatmul.mubr.f32.vlgmr.msra.gmra.mrb[0].mxu1 %v353_v16  ;;  %v2008_v16 = vpack.c.bf16 %v542_v10, %v538_v9  ;;  %v541_v17 = vld [vmem:[%s3157_s27 + $0x5a0] sm:$0xff]  ;;  %v584_v9 = vld [vmem:[%s3157_s27 + $0x6f8] sm:$0xff] }
  0xee   : > { %2243 = vmatpush1.bf16.msra.mxu1 %v2242_v18  ;;  %1989 = vmatprep.subr.bf16.mxu0 %v1988_v19  ;;  %v539_v18 = vld [vmem:[%s3157_s27 + $0x590] sm:$0xff]  ;;  %v2010_v26 = vpack.c.bf16 %v541_v17, %v537_v14  ;;  %v581_v14 = vld [vmem:[%s3157_s27 + $0x6e0] sm:$0xff] }
  0xef   : > { %2245 = vmatprep.subr.bf16.mxu1 %v2244_v23  ;;  %v543_v19 = vld [vmem:[%s3157_s27 + $0x5b0] sm:$0xff]  ;;  %v356_v23 = vld [vmem:[%s3149_s28 + $0x18] sm:$0xff]  ;;  %v601_v49 = vld [vmem:[%s3157_s27 + $0x780] sm:$0xff] }
  0xf0   : > { %1008 = vmatprep.mubr.f32.mxu0 %v356_v23  ;;  %1292 = vmatprep.mubr.f32.mxu1 %v356_v23  ;;  %v2266_v27 = vpack.c.bf16 %v543_v19, %v539_v18  ;;  %v583_v17 = vld [vmem:[%s3157_s27 + $0x6f0] sm:$0xff]  ;;  %v586_v18 = vld [vmem:[%s3157_s27 + $0x708] sm:$0xff]  ;;  %v609_v61 = vld [vmem:[%s3157_s27 + $0x7c0] sm:$0xff] }
  0xf1   : > { %1991 = vmatpush1.bf16.msra.mxu0 %v1990_v29  ;;  %v545_v29 = vld [vmem:[%s3157_s27 + $0x5c0] sm:$0xff]  ;;  %v590_v19 = vld [vmem:[%s3157_s27 + $0x728] sm:$0xff] }
  0xf2   : > { %2247 = vmatpush1.bf16.msra.mxu1 %v2246_v30  ;;  %1993 = vmatprep.subr.bf16.mxu0 %v1992_v31  ;;  %v549_v30 = vld [vmem:[%s3157_s27 + $0x5e0] sm:$0xff]  ;;  %v547_v31 = vld [vmem:[%s3157_s27 + $0x5d0] sm:$0xff]  ;;  %v2032_v24 = vpack.c.bf16 %v590_v19, %v586_v18 }
  0xf3   : > { %2249 = vmatprep.subr.bf16.mxu1 %v2248_v35  ;;  %v558_v35 = vld [vmem:[%s3157_s27 + $0x628] sm:$0xff]  ;;  %v2014_v38 = vpack.c.bf16 %v549_v30, %v545_v29  ;;  %v2270_v39 = vpack.c.bf16 %v551_v33, %v547_v31  ;;  %v591_v29 = vld [vmem:[%s3157_s27 + $0x730] sm:$0xff]  ;;  %v600_v33 = vld [vmem:[%s3157_s27 + $0x778] sm:$0xff] }
  0xf4   : > { %v2016_v40 = vpack.c.bf16 %v558_v35, %v554_v34  ;;  %v594_v30 = vld [vmem:[%s3157_s27 + $0x748] sm:$0xff]  ;;  %v355_v18 = vld [vmem:[%s3149_s28 + $0x10] sm:$0xff] }
  0xf5   : > { %1995 = vmatpush1.bf16.msra.mxu0 %v1994_v41  ;;  %v553_v41 = vld [vmem:[%s3157_s27 + $0x600] sm:$0xff]  ;;  %v598_v31 = vld [vmem:[%s3157_s27 + $0x768] sm:$0xff] }
  0xf6   : > { %2251 = vmatpush1.bf16.msra.mxu1 %v2250_v42  ;;  %1997 = vmatprep.subr.bf16.mxu0 %v1996_v43  ;;  %v557_v42 = vld [vmem:[%s3157_s27 + $0x620] sm:$0xff]  ;;  %v555_v43 = vld [vmem:[%s3157_s27 + $0x610] sm:$0xff]  ;;  %v2036_v36 = vpack.c.bf16 %v598_v31, %v594_v30  ;;  %v640_v30 = vld [vmem:[%s3157_s27 + $0x8b8] sm:$0xff] }
  0xf7   : > { %2253 = vmatprep.subr.bf16.mxu1 %v2252_v47  ;;  %v566_v47 = vld [vmem:[%s3157_s27 + $0x668] sm:$0xff]  ;;  %v2018_v50 = vpack.c.bf16 %v557_v42, %v553_v41  ;;  %v2274_v51 = vpack.c.bf16 %v559_v45, %v555_v43  ;;  %v599_v41 = vld [vmem:[%s3157_s27 + $0x770] sm:$0xff]  ;;  %v608_v45 = vld [vmem:[%s3157_s27 + $0x7b8] sm:$0xff] }
  0xf8   : > { %v2020_v52 = vpack.c.bf16 %v566_v47, %v562_v46  ;;  %v602_v42 = vld [vmem:[%s3157_s27 + $0x788] sm:$0xff] }
  0xf9   : > { %1999 = vmatpush1.bf16.msra.mxu0 %v1998_v53  ;;  %v561_v53 = vld [vmem:[%s3157_s27 + $0x640] sm:$0xff]  ;;  %v606_v43 = vld [vmem:[%s3157_s27 + $0x7a8] sm:$0xff] }
  0xfa   : > { %2255 = vmatpush1.bf16.msra.mxu1 %v2254_v54  ;;  %2001 = vmatprep.subr.bf16.mxu0 %v2000_v55  ;;  %v565_v54 = vld [vmem:[%s3157_s27 + $0x660] sm:$0xff]  ;;  %v563_v55 = vld [vmem:[%s3157_s27 + $0x650] sm:$0xff]  ;;  %v2040_v48 = vpack.c.bf16 %v606_v43, %v602_v42  ;;  %v358_v31 = vld [vmem:[%s3149_s28 + $0x28] sm:$0xff] }
  0xfb   : > { %2257 = vmatprep.subr.bf16.mxu1 %v2256_v59  ;;  %v574_v59 = vld [vmem:[%s3157_s27 + $0x6a8] sm:$0xff]  ;;  %v2022_v62 = vpack.c.bf16 %v565_v54, %v561_v53  ;;  %v2278_v63 = vpack.c.bf16 %v567_v57, %v563_v55  ;;  %v607_v53 = vld [vmem:[%s3157_s27 + $0x7b0] sm:$0xff]  ;;  %v616_v57 = vld [vmem:[%s3157_s27 + $0x7f8] sm:$0xff] }
  0xfc   : > { %v2024_v0 = vpack.c.bf16 %v574_v59, %v570_v58  ;;  %v610_v54 = vld [vmem:[%s3157_s27 + $0x7c8] sm:$0xff]  ;;  %v644_v42 = vld [vmem:[%s3157_s27 + $0x8d8] sm:$0xff] }
  0xfd   : > { %2003 = vmatpush1.bf16.msra.mxu0 %v2002_v1  ;;  %v569_v1 = vld [vmem:[%s3157_s27 + $0x680] sm:$0xff]  ;;  %v614_v55 = vld [vmem:[%s3157_s27 + $0x7e8] sm:$0xff]  ;;  %v648_v43 = vld [vmem:[%s3157_s27 + $0x8f8] sm:$0xff] }
  0xfe   : > { %2259 = vmatpush1.bf16.msra.mxu1 %v2258_v2  ;;  %2005 = vmatprep.subr.bf16.mxu0 %v2004_v3  ;;  %v573_v2 = vld [vmem:[%s3157_s27 + $0x6a0] sm:$0xff]  ;;  %v571_v3 = vld [vmem:[%s3157_s27 + $0x690] sm:$0xff]  ;;  %v2044_v60 = vpack.c.bf16 %v614_v55, %v610_v54  ;;  %v652_v54 = vld [vmem:[%s3157_s27 + $0x918] sm:$0xff] }
  0xff   : > { %2261 = vmatprep.subr.bf16.mxu1 %v2260_v7  ;;  %v582_v7 = vld [vmem:[%s3157_s27 + $0x6e8] sm:$0xff]  ;;  %v2026_v10 = vpack.c.bf16 %v573_v2, %v569_v1  ;;  %v2282_v11 = vpack.c.bf16 %v575_v5, %v571_v3  ;;  %v615_v1 = vld [vmem:[%s3157_s27 + $0x7f0] sm:$0xff]  ;;  %v624_v5 = vld [vmem:[%s3157_s27 + $0x838] sm:$0xff] }
 0x100   : > { %v2028_v12 = vpack.c.bf16 %v582_v7, %v578_v6  ;;  %v618_v2 = vld [vmem:[%s3157_s27 + $0x808] sm:$0xff]  ;;  %v656_v55 = vld [vmem:[%s3157_s27 + $0x938] sm:$0xff] }
 0x101   : > { %2007 = vmatpush1.bf16.msra.mxu0 %v2006_v13  ;;  %v577_v13 = vld [vmem:[%s3157_s27 + $0x6c0] sm:$0xff]  ;;  %v622_v3 = vld [vmem:[%s3157_s27 + $0x828] sm:$0xff] }
 0x102   : > { %2263 = vmatpush1.bf16.msra.mxu1 %v2262_v15  ;;  %2009 = vmatprep.subr.bf16.mxu0 %v2008_v16  ;;  %v579_v15 = vld [vmem:[%s3157_s27 + $0x6d0] sm:$0xff]  ;;  %v2284_v16 = vpack.c.bf16 %v584_v9, %v580_v8  ;;  %v2030_v22 = vpack.c.bf16 %v581_v14, %v577_v13  ;;  %v2048_v8 = vpack.c.bf16 %v622_v3, %v618_v2  ;;  %v617_v9 = vld [vmem:[%s3157_s27 + $0x800] sm:$0xff]  ;;  %v626_v14 = vld [vmem:[%s3157_s27 + $0x848] sm:$0xff] }
 0x103   : > { %2265 = vmatprep.subr.bf16.mxu1 %v2264_v20  ;;  %v588_v20 = vld [vmem:[%s3157_s27 + $0x718] sm:$0xff]  ;;  %v2286_v23 = vpack.c.bf16 %v583_v17, %v579_v15  ;;  %v623_v13 = vld [vmem:[%s3157_s27 + $0x830] sm:$0xff]  ;;  %v630_v15 = vld [vmem:[%s3157_s27 + $0x868] sm:$0xff] }
 0x104   : > { %v632_v17 = vld [vmem:[%s3157_s27 + $0x878] sm:$0xff] }
 0x105   : > { %2011 = vmatpush1.bf16.msra.mxu0 %v2010_v26  ;;  %v589_v26 = vld [vmem:[%s3157_s27 + $0x720] sm:$0xff]  ;;  %v660_v2 = vld [vmem:[%s3157_s27 + $0x958] sm:$0xff] }
 0x106   : > { %2267 = vmatpush1.bf16.msra.mxu1 %v2266_v27  ;;  %2013 = vmatprep.subr.bf16.mxu0 %v2012_v28  ;;  %v587_v27 = vld [vmem:[%s3157_s27 + $0x710] sm:$0xff]  ;;  %v2288_v28 = vpack.c.bf16 %v592_v21, %v588_v20  ;;  %v2034_v34 = vpack.c.bf16 %v589_v26, %v585_v25  ;;  %v2052_v21 = vpack.c.bf16 %v630_v15, %v626_v14  ;;  %v664_v3 = vld [vmem:[%s3157_s27 + $0x978] sm:$0xff] }
 0x107   : > { %2269 = vmatprep.subr.bf16.mxu1 %v2268_v32  ;;  %v596_v32 = vld [vmem:[%s3157_s27 + $0x758] sm:$0xff]  ;;  %v2290_v35 = vpack.c.bf16 %v591_v29, %v587_v27  ;;  %v631_v26 = vld [vmem:[%s3157_s27 + $0x870] sm:$0xff]  ;;  %v634_v27 = vld [vmem:[%s3157_s27 + $0x888] sm:$0xff] }
 0x108   : > { %v636_v29 = vld [vmem:[%s3157_s27 + $0x898] sm:$0xff] }
 0x109   : > { %2015 = vmatpush1.bf16.msra.mxu0 %v2014_v38  ;;  %v597_v38 = vld [vmem:[%s3157_s27 + $0x760] sm:$0xff]  ;;  %v668_v14 = vld [vmem:[%s3157_s27 + $0x998] sm:$0xff] }
 0x10a   : > { %2271 = vmatpush1.bf16.msra.mxu1 %v2270_v39  ;;  %2017 = vmatprep.subr.bf16.mxu0 %v2016_v40  ;;  %v595_v39 = vld [vmem:[%s3157_s27 + $0x750] sm:$0xff]  ;;  %v2292_v40 = vpack.c.bf16 %v600_v33, %v596_v32  ;;  %v2038_v46 = vpack.c.bf16 %v597_v38, %v593_v37  ;;  %v2312_v38 = vpack.c.bf16 %v640_v30, %v636_v29  ;;  %v672_v15 = vld [vmem:[%s3157_s27 + $0x9b8] sm:$0xff] }
 0x10b   : > { %2273 = vmatprep.subr.bf16.mxu1 %v2272_v44  ;;  %v604_v44 = vld [vmem:[%s3157_s27 + $0x798] sm:$0xff]  ;;  %v2294_v47 = vpack.c.bf16 %v599_v41, %v595_v39  ;;  %v635_v37 = vld [vmem:[%s3157_s27 + $0x890] sm:$0xff]  ;;  %v646_v41 = vld [vmem:[%s3157_s27 + $0x8e8] sm:$0xff] }
 0x10c   : > { %v639_v39 = vld [vmem:[%s3157_s27 + $0x8b0] sm:$0xff] }
 0x10d   : > { %2019 = vmatpush1.bf16.msra.mxu0 %v2018_v50  ;;  %v605_v50 = vld [vmem:[%s3157_s27 + $0x7a0] sm:$0xff] }
 0x10e   : > { %2275 = vmatpush1.bf16.msra.mxu1 %v2274_v51  ;;  %2021 = vmatprep.subr.bf16.mxu0 %v2020_v52  ;;  %v603_v51 = vld [vmem:[%s3157_s27 + $0x790] sm:$0xff]  ;;  %v2296_v52 = vpack.c.bf16 %v608_v45, %v604_v44  ;;  %v2042_v58 = vpack.c.bf16 %v605_v50, %v601_v49  ;;  %v2314_v45 = vpack.c.bf16 %v639_v39, %v635_v37  ;;  %v686_v37 = vld [vmem:[%s3157_s27 + $0xa28] sm:$0xff]  ;;  %v688_v39 = vld [vmem:[%s3157_s27 + $0xa38] sm:$0xff] }
 0x10f   : > { %2277 = vmatprep.subr.bf16.mxu1 %v2276_v56  ;;  %v612_v56 = vld [vmem:[%s3157_s27 + $0x7d8] sm:$0xff]  ;;  %v2298_v59 = vpack.c.bf16 %v607_v53, %v603_v51  ;;  %v643_v49 = vld [vmem:[%s3157_s27 + $0x8d0] sm:$0xff]  ;;  %v2316_v50 = vpack.c.bf16 %v648_v43, %v644_v42  ;;  %v654_v53 = vld [vmem:[%s3157_s27 + $0x928] sm:$0xff] }
 0x110   : > { %v647_v51 = vld [vmem:[%s3157_s27 + $0x8f0] sm:$0xff]  ;;  %v681_v43 = vld [vmem:[%s3157_s27 + $0xa00] sm:$0xff] }
 0x111   : > { %2023 = vmatpush1.bf16.msra.mxu0 %v2022_v62  ;;  %v613_v62 = vld [vmem:[%s3157_s27 + $0x7e0] sm:$0xff] }
 0x112   : > { %2279 = vmatpush1.bf16.msra.mxu1 %v2278_v63  ;;  %2025 = vmatprep.subr.bf16.mxu0 %v2024_v0  ;;  %v611_v63 = vld [vmem:[%s3157_s27 + $0x7d0] sm:$0xff]  ;;  %v2300_v0 = vpack.c.bf16 %v616_v57, %v612_v56  ;;  %v2046_v6 = vpack.c.bf16 %v613_v62, %v609_v61  ;;  %v2318_v57 = vpack.c.bf16 %v647_v51, %v643_v49  ;;  %v694_v49 = vld [vmem:[%s3157_s27 + $0xa68] sm:$0xff]  ;;  %v696_v51 = vld [vmem:[%s3157_s27 + $0xa78] sm:$0xff] }
 0x113   : > { %2281 = vmatprep.subr.bf16.mxu1 %v2280_v4  ;;  %v620_v4 = vld [vmem:[%s3157_s27 + $0x818] sm:$0xff]  ;;  %v2302_v7 = vpack.c.bf16 %v615_v1, %v611_v63  ;;  %v651_v61 = vld [vmem:[%s3157_s27 + $0x910] sm:$0xff]  ;;  %v2320_v62 = vpack.c.bf16 %v656_v55, %v652_v54  ;;  %v662_v1 = vld [vmem:[%s3157_s27 + $0x968] sm:$0xff] }
 0x114   : > { %v655_v63 = vld [vmem:[%s3157_s27 + $0x930] sm:$0xff]  ;;  %v689_v55 = vld [vmem:[%s3157_s27 + $0xa40] sm:$0xff] }
 0x115   : > { %2027 = vmatpush1.bf16.msra.mxu0 %v2026_v10  ;;  %v621_v10 = vld [vmem:[%s3157_s27 + $0x820] sm:$0xff] }
 0x116   : > { %2283 = vmatpush1.bf16.msra.mxu1 %v2282_v11  ;;  %2029 = vmatprep.subr.bf16.mxu0 %v2028_v12  ;;  %v619_v11 = vld [vmem:[%s3157_s27 + $0x810] sm:$0xff]  ;;  %v2304_v12 = vpack.c.bf16 %v624_v5, %v620_v4  ;;  %v2050_v19 = vpack.c.bf16 %v621_v10, %v617_v9  ;;  %v2322_v5 = vpack.c.bf16 %v655_v63, %v651_v61  ;;  %v702_v61 = vld [vmem:[%s3157_s27 + $0xaa8] sm:$0xff]  ;;  %v704_v63 = vld [vmem:[%s3157_s27 + $0xab8] sm:$0xff] }
 0x117   : > { %2285 = vmatprep.subr.bf16.mxu1 %v2284_v16  ;;  %v628_v16 = vld [vmem:[%s3157_s27 + $0x858] sm:$0xff]  ;;  %v2306_v20 = vpack.c.bf16 %v623_v13, %v619_v11  ;;  %v659_v9 = vld [vmem:[%s3157_s27 + $0x950] sm:$0xff]  ;;  %v2324_v10 = vpack.c.bf16 %v664_v3, %v660_v2  ;;  %v670_v13 = vld [vmem:[%s3157_s27 + $0x9a8] sm:$0xff] }
 0x118   : > { %v2308_v25 = vpack.c.bf16 %v632_v17, %v628_v16  ;;  %v663_v11 = vld [vmem:[%s3157_s27 + $0x970] sm:$0xff]  ;;  %v697_v3 = vld [vmem:[%s3157_s27 + $0xa80] sm:$0xff] }
 0x119   : > { %2031 = vmatpush1.bf16.msra.mxu0 %v2030_v22  ;;  %v625_v22 = vld [vmem:[%s3157_s27 + $0x840] sm:$0xff]  ;;  %v2326_v17 = vpack.c.bf16 %v663_v11, %v659_v9  ;;  %v710_v9 = vld [vmem:[%s3157_s27 + $0xae8] sm:$0xff]  ;;  %v712_v11 = vld [vmem:[%s3157_s27 + $0xaf8] sm:$0xff] }
 0x11a   : > { %2287 = vmatpush1.bf16.msra.mxu1 %v2286_v23  ;;  %2033 = vmatprep.subr.bf16.mxu0 %v2032_v24  ;;  %v629_v23 = vld [vmem:[%s3157_s27 + $0x860] sm:$0xff]  ;;  %v627_v24 = vld [vmem:[%s3157_s27 + $0x850] sm:$0xff] }
 0x11b   : > { %2289 = vmatprep.subr.bf16.mxu1 %v2288_v28  ;;  %v638_v28 = vld [vmem:[%s3157_s27 + $0x8a8] sm:$0xff]  ;;  %v2054_v32 = vpack.c.bf16 %v629_v23, %v625_v22  ;;  %v2310_v33 = vpack.c.bf16 %v631_v26, %v627_v24  ;;  %v2328_v22 = vpack.c.bf16 %v672_v15, %v668_v14  ;;  %v671_v23 = vld [vmem:[%s3157_s27 + $0x9b0] sm:$0xff]  ;;  %v676_v26 = vld [vmem:[%s3157_s27 + $0x9d8] sm:$0xff] }
 0x11c   : > { %v674_v24 = vld [vmem:[%s3157_s27 + $0x9c8] sm:$0xff]  ;;  %v705_v15 = vld [vmem:[%s3157_s27 + $0xac0] sm:$0xff] }
 0x11d   : > { %2035 = vmatpush1.bf16.msra.mxu0 %v2034_v34  ;;  %v2056_v34 = vpack.c.bf16 %v638_v28, %v634_v27  ;;  %v680_v27 = vld [vmem:[%s3157_s27 + $0x9f8] sm:$0xff] }
 0x11e   : > { %2291 = vmatpush1.bf16.msra.mxu1 %v2290_v35  ;;  %2037 = vmatprep.subr.bf16.mxu0 %v2036_v36  ;;  %v633_v35 = vld [vmem:[%s3157_s27 + $0x880] sm:$0xff] }
 0x11f   : > { %2293 = vmatprep.subr.bf16.mxu1 %v2292_v40  ;;  %v637_v36 = vld [vmem:[%s3157_s27 + $0x8a0] sm:$0xff]  ;;  %v642_v40 = vld [vmem:[%s3157_s27 + $0x8c8] sm:$0xff] }
 0x120   : > { %v2058_v44 = vpack.c.bf16 %v637_v36, %v633_v35  ;;  %v679_v35 = vld [vmem:[%s3157_s27 + $0x9f0] sm:$0xff]  ;;  %v682_v36 = vld [vmem:[%s3157_s27 + $0xa08] sm:$0xff] }
 0x121   : > { %2039 = vmatpush1.bf16.msra.mxu0 %v2038_v46  ;;  %v2060_v46 = vpack.c.bf16 %v646_v41, %v642_v40  ;;  %v2080_v42 = vpack.c.bf16 %v686_v37, %v682_v36 }
 0x122   : > { %2295 = vmatpush1.bf16.msra.mxu1 %v2294_v47  ;;  %2041 = vmatprep.subr.bf16.mxu0 %v2040_v48  ;;  %v641_v47 = vld [vmem:[%s3157_s27 + $0x8c0] sm:$0xff] }
 0x123   : > { %2297 = vmatprep.subr.bf16.mxu1 %v2296_v52  ;;  %v645_v48 = vld [vmem:[%s3157_s27 + $0x8e0] sm:$0xff]  ;;  %v650_v52 = vld [vmem:[%s3157_s27 + $0x908] sm:$0xff] }
 0x124   : > { %v2062_v56 = vpack.c.bf16 %v645_v48, %v641_v47  ;;  %v687_v47 = vld [vmem:[%s3157_s27 + $0xa30] sm:$0xff]  ;;  %v690_v48 = vld [vmem:[%s3157_s27 + $0xa48] sm:$0xff] }
 0x125   : > { %2043 = vmatpush1.bf16.msra.mxu0 %v2042_v58  ;;  %v2064_v58 = vpack.c.bf16 %v654_v53, %v650_v52  ;;  %v2084_v54 = vpack.c.bf16 %v694_v49, %v690_v48 }
 0x126   : > { %2299 = vmatpush1.bf16.msra.mxu1 %v2298_v59  ;;  %2045 = vmatprep.subr.bf16.mxu0 %v2044_v60  ;;  %v649_v59 = vld [vmem:[%s3157_s27 + $0x900] sm:$0xff] }
 0x127   : > { %2301 = vmatprep.subr.bf16.mxu1 %v2300_v0  ;;  %v653_v60 = vld [vmem:[%s3157_s27 + $0x920] sm:$0xff]  ;;  %v658_v0 = vld [vmem:[%s3157_s27 + $0x948] sm:$0xff] }
 0x128   : > { %v2066_v4 = vpack.c.bf16 %v653_v60, %v649_v59  ;;  %v695_v59 = vld [vmem:[%s3157_s27 + $0xa70] sm:$0xff]  ;;  %v698_v60 = vld [vmem:[%s3157_s27 + $0xa88] sm:$0xff] }
 0x129   : > { %2047 = vmatpush1.bf16.msra.mxu0 %v2046_v6  ;;  %v2068_v6 = vpack.c.bf16 %v662_v1, %v658_v0  ;;  %v2088_v2 = vpack.c.bf16 %v702_v61, %v698_v60 }
 0x12a   : > { %2303 = vmatpush1.bf16.msra.mxu1 %v2302_v7  ;;  %2049 = vmatprep.subr.bf16.mxu0 %v2048_v8  ;;  %v657_v7 = vld [vmem:[%s3157_s27 + $0x940] sm:$0xff] }
 0x12b   : > { %2305 = vmatprep.subr.bf16.mxu1 %v2304_v12  ;;  %v661_v8 = vld [vmem:[%s3157_s27 + $0x960] sm:$0xff]  ;;  %v666_v12 = vld [vmem:[%s3157_s27 + $0x988] sm:$0xff] }
 0x12c   : > { %1009 = vmatmul.mubr.f32.vlgmr.msra.gmra.mrb[0].mxu0 %v355_v18  ;;  %v2070_v16 = vpack.c.bf16 %v661_v8, %v657_v7  ;;  %v703_v7 = vld [vmem:[%s3157_s27 + $0xab0] sm:$0xff]  ;;  %v706_v8 = vld [vmem:[%s3157_s27 + $0xac8] sm:$0xff] }
 0x12d   : > { %2051 = vmatpush1.bf16.msra.mxu0 %v2050_v19  ;;  %1293 = vmatmul.mubr.f32.vlgmr.msra.gmra.mrb[0].mxu1 %v355_v18  ;;  %v2072_v18 = vpack.c.bf16 %v670_v13, %v666_v12  ;;  %v665_v19 = vld [vmem:[%s3157_s27 + $0x980] sm:$0xff]  ;;  %v2092_v14 = vpack.c.bf16 %v710_v9, %v706_v8 }
 0x12e   : > { %2307 = vmatpush1.bf16.msra.mxu1 %v2306_v20  ;;  %2053 = vmatprep.subr.bf16.mxu0 %v2052_v21  ;;  %v669_v20 = vld [vmem:[%s3157_s27 + $0x9a0] sm:$0xff]  ;;  %v667_v21 = vld [vmem:[%s3157_s27 + $0x990] sm:$0xff] }
 0x12f   : > { %2309 = vmatprep.subr.bf16.mxu1 %v2308_v25  ;;  %1079 = vmatprep.mubr.f32.mxu0 %v358_v31  ;;  %v678_v25 = vld [vmem:[%s3157_s27 + $0x9e8] sm:$0xff]  ;;  %v2074_v28 = vpack.c.bf16 %v669_v20, %v665_v19  ;;  %v2330_v29 = vpack.c.bf16 %v671_v23, %v667_v21  ;;  %v711_v19 = vld [vmem:[%s3157_s27 + $0xaf0] sm:$0xff]  ;;  %v720_v23 = vld [vmem:[%s3157_s27 + $0xb38] sm:$0xff] }
 0x130   : > { %1363 = vmatprep.mubr.f32.mxu1 %v358_v31  ;;  %v2076_v30 = vpack.c.bf16 %v678_v25, %v674_v24  ;;  %v673_v31 = vld [vmem:[%s3157_s27 + $0x9c0] sm:$0xff]  ;;  %v714_v20 = vld [vmem:[%s3157_s27 + $0xb08] sm:$0xff] }
 0x131   : > { %2055 = vmatpush1.bf16.msra.mxu0 %v2054_v32  ;;  %v677_v32 = vld [vmem:[%s3157_s27 + $0x9e0] sm:$0xff]  ;;  %v718_v21 = vld [vmem:[%s3157_s27 + $0xb28] sm:$0xff] }
 0x132   : > { %2311 = vmatpush1.bf16.msra.mxu1 %v2310_v33  ;;  %2057 = vmatprep.subr.bf16.mxu0 %v2056_v34  ;;  %v675_v33 = vld [vmem:[%s3157_s27 + $0x9d0] sm:$0xff]  ;;  %v2332_v34 = vpack.c.bf16 %v680_v27, %v676_v26  ;;  %v2078_v40 = vpack.c.bf16 %v677_v32, %v673_v31  ;;  %v2096_v26 = vpack.c.bf16 %v718_v21, %v714_v20  ;;  %v713_v27 = vld [vmem:[%s3157_s27 + $0xb00] sm:$0xff]  ;;  %v722_v32 = vld [vmem:[%s3157_s27 + $0xb48] sm:$0xff] }
 0x133   : > { %2313 = vmatprep.subr.bf16.mxu1 %v2312_v38  ;;  %v684_v38 = vld [vmem:[%s3157_s27 + $0xa18] sm:$0xff]  ;;  %v2334_v41 = vpack.c.bf16 %v679_v35, %v675_v33  ;;  %v719_v31 = vld [vmem:[%s3157_s27 + $0xb30] sm:$0xff]  ;;  %v726_v33 = vld [vmem:[%s3157_s27 + $0xb68] sm:$0xff] }
 0x134   : > { %v728_v35 = vld [vmem:[%s3157_s27 + $0xb78] sm:$0xff]  ;;  %v357_v20 = vld [vmem:[%s3149_s28 + $0x20] sm:$0xff] }
 0x135   : > { %2059 = vmatpush1.bf16.msra.mxu0 %v2058_v44  ;;  %v685_v44 = vld [vmem:[%s3157_s27 + $0xa20] sm:$0xff] }
 0x136   : > { %2315 = vmatpush1.bf16.msra.mxu1 %v2314_v45  ;;  %2061 = vmatprep.subr.bf16.mxu0 %v2060_v46  ;;  %v683_v45 = vld [vmem:[%s3157_s27 + $0xa10] sm:$0xff]  ;;  %v2336_v46 = vpack.c.bf16 %v688_v39, %v684_v38  ;;  %v2082_v52 = vpack.c.bf16 %v685_v44, %v681_v43  ;;  %v2100_v38 = vpack.c.bf16 %v726_v33, %v722_v32  ;;  %v721_v39 = vld [vmem:[%s3157_s27 + $0xb40] sm:$0xff]  ;;  %v730_v44 = vld [vmem:[%s3157_s27 + $0xb88] sm:$0xff] }
 0x137   : > { %2317 = vmatprep.subr.bf16.mxu1 %v2316_v50  ;;  %v692_v50 = vld [vmem:[%s3157_s27 + $0xa58] sm:$0xff]  ;;  %v2338_v53 = vpack.c.bf16 %v687_v47, %v683_v45  ;;  %v727_v43 = vld [vmem:[%s3157_s27 + $0xb70] sm:$0xff]  ;;  %v734_v45 = vld [vmem:[%s3157_s27 + $0xba8] sm:$0xff] }
 0x138   : > { %v736_v47 = vld [vmem:[%s3157_s27 + $0xbb8] sm:$0xff] }
 0x139   : > { %2063 = vmatpush1.bf16.msra.mxu0 %v2062_v56  ;;  %v693_v56 = vld [vmem:[%s3157_s27 + $0xa60] sm:$0xff]  ;;  %v768_v32 = vld [vmem:[%s3157_s27 + $0xcb8] sm:$0xff] }
 0x13a   : > { %2319 = vmatpush1.bf16.msra.mxu1 %v2318_v57  ;;  %2065 = vmatprep.subr.bf16.mxu0 %v2064_v58  ;;  %v691_v57 = vld [vmem:[%s3157_s27 + $0xa50] sm:$0xff]  ;;  %v2340_v58 = vpack.c.bf16 %v696_v51, %v692_v50  ;;  %v2086_v0 = vpack.c.bf16 %v693_v56, %v689_v55  ;;  %v2104_v50 = vpack.c.bf16 %v734_v45, %v730_v44  ;;  %v729_v51 = vld [vmem:[%s3157_s27 + $0xb80] sm:$0xff]  ;;  %v738_v56 = vld [vmem:[%s3157_s27 + $0xbc8] sm:$0xff] }
 0x13b   : > { %2321 = vmatprep.subr.bf16.mxu1 %v2320_v62  ;;  %v700_v62 = vld [vmem:[%s3157_s27 + $0xa98] sm:$0xff]  ;;  %v2342_v1 = vpack.c.bf16 %v695_v59, %v691_v57  ;;  %v735_v55 = vld [vmem:[%s3157_s27 + $0xbb0] sm:$0xff]  ;;  %v742_v57 = vld [vmem:[%s3157_s27 + $0xbe8] sm:$0xff] }
 0x13c   : > { %v744_v59 = vld [vmem:[%s3157_s27 + $0xbf8] sm:$0xff] }
 0x13d   : > { %2067 = vmatpush1.bf16.msra.mxu0 %v2066_v4  ;;  %v701_v4 = vld [vmem:[%s3157_s27 + $0xaa0] sm:$0xff]  ;;  %v360_v33 = vld [vmem:[%s3149_s28 + $0x38] sm:$0xff] }
 0x13e   : > { %2323 = vmatpush1.bf16.msra.mxu1 %v2322_v5  ;;  %2069 = vmatprep.subr.bf16.mxu0 %v2068_v6  ;;  %v699_v5 = vld [vmem:[%s3157_s27 + $0xa90] sm:$0xff]  ;;  %v2344_v6 = vpack.c.bf16 %v704_v63, %v700_v62  ;;  %v2090_v12 = vpack.c.bf16 %v701_v4, %v697_v3  ;;  %v2108_v62 = vpack.c.bf16 %v742_v57, %v738_v56  ;;  %v737_v63 = vld [vmem:[%s3157_s27 + $0xbc0] sm:$0xff]  ;;  %v746_v4 = vld [vmem:[%s3157_s27 + $0xc08] sm:$0xff] }
 0x13f   : > { %2325 = vmatprep.subr.bf16.mxu1 %v2324_v10  ;;  %v708_v10 = vld [vmem:[%s3157_s27 + $0xad8] sm:$0xff]  ;;  %v2346_v13 = vpack.c.bf16 %v703_v7, %v699_v5  ;;  %v743_v3 = vld [vmem:[%s3157_s27 + $0xbf0] sm:$0xff]  ;;  %v750_v5 = vld [vmem:[%s3157_s27 + $0xc28] sm:$0xff] }
 0x140   : > { %v752_v7 = vld [vmem:[%s3157_s27 + $0xc38] sm:$0xff] }
 0x141   : > { %2071 = vmatpush1.bf16.msra.mxu0 %v2070_v16  ;;  %v709_v16 = vld [vmem:[%s3157_s27 + $0xae0] sm:$0xff]  ;;  %v772_v44 = vld [vmem:[%s3157_s27 + $0xcd8] sm:$0xff] }
 0x142   : > { %2327 = vmatpush1.bf16.msra.mxu1 %v2326_v17  ;;  %2073 = vmatprep.subr.bf16.mxu0 %v2072_v18  ;;  %v707_v17 = vld [vmem:[%s3157_s27 + $0xad0] sm:$0xff]  ;;  %v2348_v18 = vpack.c.bf16 %v712_v11, %v708_v10  ;;  %v2094_v24 = vpack.c.bf16 %v709_v16, %v705_v15  ;;  %v2112_v10 = vpack.c.bf16 %v750_v5, %v746_v4  ;;  %v745_v11 = vld [vmem:[%s3157_s27 + $0xc00] sm:$0xff]  ;;  %v754_v16 = vld [vmem:[%s3157_s27 + $0xc48] sm:$0xff] }
 0x143   : > { %2329 = vmatprep.subr.bf16.mxu1 %v2328_v22  ;;  %v716_v22 = vld [vmem:[%s3157_s27 + $0xb18] sm:$0xff]  ;;  %v2350_v25 = vpack.c.bf16 %v711_v19, %v707_v17  ;;  %v751_v15 = vld [vmem:[%s3157_s27 + $0xc30] sm:$0xff]  ;;  %v758_v17 = vld [vmem:[%s3157_s27 + $0xc68] sm:$0xff] }
 0x144   : > { %v760_v19 = vld [vmem:[%s3157_s27 + $0xc78] sm:$0xff] }
 0x145   : > { %2075 = vmatpush1.bf16.msra.mxu0 %v2074_v28  ;;  %v717_v28 = vld [vmem:[%s3157_s27 + $0xb20] sm:$0xff]  ;;  %v776_v45 = vld [vmem:[%s3157_s27 + $0xcf8] sm:$0xff] }
 0x146   : > { %2331 = vmatpush1.bf16.msra.mxu1 %v2330_v29  ;;  %2077 = vmatprep.subr.bf16.mxu0 %v2076_v30  ;;  %v715_v29 = vld [vmem:[%s3157_s27 + $0xb10] sm:$0xff]  ;;  %v2352_v30 = vpack.c.bf16 %v720_v23, %v716_v22  ;;  %v2098_v36 = vpack.c.bf16 %v717_v28, %v713_v27  ;;  %v2116_v23 = vpack.c.bf16 %v758_v17, %v754_v16  ;;  %v780_v56 = vld [vmem:[%s3157_s27 + $0xd18] sm:$0xff] }
 0x147   : > { %2333 = vmatprep.subr.bf16.mxu1 %v2332_v34  ;;  %v724_v34 = vld [vmem:[%s3157_s27 + $0xb58] sm:$0xff]  ;;  %v2354_v37 = vpack.c.bf16 %v719_v31, %v715_v29  ;;  %v759_v28 = vld [vmem:[%s3157_s27 + $0xc70] sm:$0xff]  ;;  %v762_v29 = vld [vmem:[%s3157_s27 + $0xc88] sm:$0xff] }
 0x148   : > { %v764_v31 = vld [vmem:[%s3157_s27 + $0xc98] sm:$0xff] }
 0x149   : > { %2079 = vmatpush1.bf16.msra.mxu0 %v2078_v40  ;;  %v725_v40 = vld [vmem:[%s3157_s27 + $0xb60] sm:$0xff]  ;;  %v784_v57 = vld [vmem:[%s3157_s27 + $0xd38] sm:$0xff] }
 0x14a   : > { %2335 = vmatpush1.bf16.msra.mxu1 %v2334_v41  ;;  %2081 = vmatprep.subr.bf16.mxu0 %v2080_v42  ;;  %v723_v41 = vld [vmem:[%s3157_s27 + $0xb50] sm:$0xff]  ;;  %v2356_v42 = vpack.c.bf16 %v728_v35, %v724_v34  ;;  %v2102_v48 = vpack.c.bf16 %v725_v40, %v721_v39  ;;  %v2376_v40 = vpack.c.bf16 %v768_v32, %v764_v31  ;;  %v788_v4 = vld [vmem:[%s3157_s27 + $0xd58] sm:$0xff] }
 0x14b   : > { %2337 = vmatprep.subr.bf16.mxu1 %v2336_v46  ;;  %v732_v46 = vld [vmem:[%s3157_s27 + $0xb98] sm:$0xff]  ;;  %v2358_v49 = vpack.c.bf16 %v727_v43, %v723_v41  ;;  %v763_v39 = vld [vmem:[%s3157_s27 + $0xc90] sm:$0xff]  ;;  %v774_v43 = vld [vmem:[%s3157_s27 + $0xce8] sm:$0xff] }
 0x14c   : > { %v767_v41 = vld [vmem:[%s3157_s27 + $0xcb0] sm:$0xff]  ;;  %v792_v5 = vld [vmem:[%s3157_s27 + $0xd78] sm:$0xff] }
 0x14d   : > { %2083 = vmatpush1.bf16.msra.mxu0 %v2082_v52  ;;  %v733_v52 = vld [vmem:[%s3157_s27 + $0xba0] sm:$0xff]  ;;  %v796_v16 = vld [vmem:[%s3157_s27 + $0xd98] sm:$0xff] }
 0x14e   : > { %2339 = vmatpush1.bf16.msra.mxu1 %v2338_v53  ;;  %2085 = vmatprep.subr.bf16.mxu0 %v2084_v54  ;;  %v731_v53 = vld [vmem:[%s3157_s27 + $0xb90] sm:$0xff]  ;;  %v2360_v54 = vpack.c.bf16 %v736_v47, %v732_v46  ;;  %v2106_v60 = vpack.c.bf16 %v733_v52, %v729_v51  ;;  %v2378_v47 = vpack.c.bf16 %v767_v41, %v763_v39  ;;  %v800_v17 = vld [vmem:[%s3157_s27 + $0xdb8] sm:$0xff]  ;;  %v814_v39 = vld [vmem:[%s3157_s27 + $0xe28] sm:$0xff] }
 0x14f   : > { %2341 = vmatprep.subr.bf16.mxu1 %v2340_v58  ;;  %v740_v58 = vld [vmem:[%s3157_s27 + $0xbd8] sm:$0xff]  ;;  %v2362_v61 = vpack.c.bf16 %v735_v55, %v731_v53  ;;  %v771_v51 = vld [vmem:[%s3157_s27 + $0xcd0] sm:$0xff]  ;;  %v2380_v52 = vpack.c.bf16 %v776_v45, %v772_v44  ;;  %v782_v55 = vld [vmem:[%s3157_s27 + $0xd28] sm:$0xff] }
 0x150   : > { %v775_v53 = vld [vmem:[%s3157_s27 + $0xcf0] sm:$0xff]  ;;  %v816_v41 = vld [vmem:[%s3157_s27 + $0xe38] sm:$0xff]  ;;  %v809_v45 = vld [vmem:[%s3157_s27 + $0xe00] sm:$0xff] }
 0x151   : > { %2087 = vmatpush1.bf16.msra.mxu0 %v2086_v0  ;;  %v741_v0 = vld [vmem:[%s3157_s27 + $0xbe0] sm:$0xff] }
 0x152   : > { %2343 = vmatpush1.bf16.msra.mxu1 %v2342_v1  ;;  %2089 = vmatprep.subr.bf16.mxu0 %v2088_v2  ;;  %v739_v1 = vld [vmem:[%s3157_s27 + $0xbd0] sm:$0xff]  ;;  %v2364_v2 = vpack.c.bf16 %v744_v59, %v740_v58  ;;  %v2110_v8 = vpack.c.bf16 %v741_v0, %v737_v63  ;;  %v2382_v59 = vpack.c.bf16 %v775_v53, %v771_v51  ;;  %v822_v51 = vld [vmem:[%s3157_s27 + $0xe68] sm:$0xff]  ;;  %v824_v53 = vld [vmem:[%s3157_s27 + $0xe78] sm:$0xff] }
 0x153   : > { %2345 = vmatprep.subr.bf16.mxu1 %v2344_v6  ;;  %v748_v6 = vld [vmem:[%s3157_s27 + $0xc18] sm:$0xff]  ;;  %v2366_v9 = vpack.c.bf16 %v743_v3, %v739_v1  ;;  %v779_v63 = vld [vmem:[%s3157_s27 + $0xd10] sm:$0xff]  ;;  %v2384_v0 = vpack.c.bf16 %v784_v57, %v780_v56  ;;  %v790_v3 = vld [vmem:[%s3157_s27 + $0xd68] sm:$0xff] }
 0x154   : > { %v783_v1 = vld [vmem:[%s3157_s27 + $0xd30] sm:$0xff]  ;;  %v817_v57 = vld [vmem:[%s3157_s27 + $0xe40] sm:$0xff] }
 0x155   : > { %2091 = vmatpush1.bf16.msra.mxu0 %v2090_v12  ;;  %v749_v12 = vld [vmem:[%s3157_s27 + $0xc20] sm:$0xff] }
 0x156   : > { %2347 = vmatpush1.bf16.msra.mxu1 %v2346_v13  ;;  %2093 = vmatprep.subr.bf16.mxu0 %v2092_v14  ;;  %v747_v13 = vld [vmem:[%s3157_s27 + $0xc10] sm:$0xff]  ;;  %v2368_v14 = vpack.c.bf16 %v752_v7, %v748_v6  ;;  %v2114_v21 = vpack.c.bf16 %v749_v12, %v745_v11  ;;  %v2386_v7 = vpack.c.bf16 %v783_v1, %v779_v63  ;;  %v830_v63 = vld [vmem:[%s3157_s27 + $0xea8] sm:$0xff]  ;;  %v832_v1 = vld [vmem:[%s3157_s27 + $0xeb8] sm:$0xff] }
 0x157   : > { %2349 = vmatprep.subr.bf16.mxu1 %v2348_v18  ;;  %v756_v18 = vld [vmem:[%s3157_s27 + $0xc58] sm:$0xff]  ;;  %v2370_v22 = vpack.c.bf16 %v751_v15, %v747_v13  ;;  %v787_v11 = vld [vmem:[%s3157_s27 + $0xd50] sm:$0xff]  ;;  %v2388_v12 = vpack.c.bf16 %v792_v5, %v788_v4  ;;  %v798_v15 = vld [vmem:[%s3157_s27 + $0xda8] sm:$0xff] }
 0x158   : > { %v2372_v27 = vpack.c.bf16 %v760_v19, %v756_v18  ;;  %v791_v13 = vld [vmem:[%s3157_s27 + $0xd70] sm:$0xff]  ;;  %v825_v5 = vld [vmem:[%s3157_s27 + $0xe80] sm:$0xff] }
 0x159   : > { %2095 = vmatpush1.bf16.msra.mxu0 %v2094_v24  ;;  %v753_v24 = vld [vmem:[%s3157_s27 + $0xc40] sm:$0xff]  ;;  %v2390_v19 = vpack.c.bf16 %v791_v13, %v787_v11  ;;  %v838_v11 = vld [vmem:[%s3157_s27 + $0xee8] sm:$0xff]  ;;  %v840_v13 = vld [vmem:[%s3157_s27 + $0xef8] sm:$0xff] }
 0x15a   : > { %2351 = vmatpush1.bf16.msra.mxu1 %v2350_v25  ;;  %2097 = vmatprep.subr.bf16.mxu0 %v2096_v26  ;;  %v757_v25 = vld [vmem:[%s3157_s27 + $0xc60] sm:$0xff]  ;;  %v755_v26 = vld [vmem:[%s3157_s27 + $0xc50] sm:$0xff] }
 0x15b   : > { %2353 = vmatprep.subr.bf16.mxu1 %v2352_v30  ;;  %v766_v30 = vld [vmem:[%s3157_s27 + $0xca8] sm:$0xff]  ;;  %v2118_v34 = vpack.c.bf16 %v757_v25, %v753_v24  ;;  %v2374_v35 = vpack.c.bf16 %v759_v28, %v755_v26  ;;  %v2392_v24 = vpack.c.bf16 %v800_v17, %v796_v16  ;;  %v799_v25 = vld [vmem:[%s3157_s27 + $0xdb0] sm:$0xff]  ;;  %v804_v28 = vld [vmem:[%s3157_s27 + $0xdd8] sm:$0xff] }
 0x15c   : > { %v802_v26 = vld [vmem:[%s3157_s27 + $0xdc8] sm:$0xff]  ;;  %v833_v17 = vld [vmem:[%s3157_s27 + $0xec0] sm:$0xff] }
 0x15d   : > { %2099 = vmatpush1.bf16.msra.mxu0 %v2098_v36  ;;  %v2120_v36 = vpack.c.bf16 %v766_v30, %v762_v29  ;;  %v808_v29 = vld [vmem:[%s3157_s27 + $0xdf8] sm:$0xff] }
 0x15e   : > { %2355 = vmatpush1.bf16.msra.mxu1 %v2354_v37  ;;  %2101 = vmatprep.subr.bf16.mxu0 %v2100_v38  ;;  %v761_v37 = vld [vmem:[%s3157_s27 + $0xc80] sm:$0xff] }
 0x15f   : > { %2357 = vmatprep.subr.bf16.mxu1 %v2356_v42  ;;  %v765_v38 = vld [vmem:[%s3157_s27 + $0xca0] sm:$0xff]  ;;  %v770_v42 = vld [vmem:[%s3157_s27 + $0xcc8] sm:$0xff] }
 0x160   : > { %v2122_v46 = vpack.c.bf16 %v765_v38, %v761_v37  ;;  %v807_v37 = vld [vmem:[%s3157_s27 + $0xdf0] sm:$0xff]  ;;  %v810_v38 = vld [vmem:[%s3157_s27 + $0xe08] sm:$0xff] }
 0x161   : > { %2103 = vmatpush1.bf16.msra.mxu0 %v2102_v48  ;;  %v2124_v48 = vpack.c.bf16 %v774_v43, %v770_v42  ;;  %v2144_v44 = vpack.c.bf16 %v814_v39, %v810_v38 }
 0x162   : > { %2359 = vmatpush1.bf16.msra.mxu1 %v2358_v49  ;;  %2105 = vmatprep.subr.bf16.mxu0 %v2104_v50  ;;  %v769_v49 = vld [vmem:[%s3157_s27 + $0xcc0] sm:$0xff] }
 0x163   : > { %2361 = vmatprep.subr.bf16.mxu1 %v2360_v54  ;;  %v773_v50 = vld [vmem:[%s3157_s27 + $0xce0] sm:$0xff]  ;;  %v778_v54 = vld [vmem:[%s3157_s27 + $0xd08] sm:$0xff] }
 0x164   : > { %v2126_v58 = vpack.c.bf16 %v773_v50, %v769_v49  ;;  %v815_v49 = vld [vmem:[%s3157_s27 + $0xe30] sm:$0xff]  ;;  %v818_v50 = vld [vmem:[%s3157_s27 + $0xe48] sm:$0xff] }
 0x165   : > { %2107 = vmatpush1.bf16.msra.mxu0 %v2106_v60  ;;  %v2128_v60 = vpack.c.bf16 %v782_v55, %v778_v54  ;;  %v2148_v56 = vpack.c.bf16 %v822_v51, %v818_v50 }
 0x166   : > { %2363 = vmatpush1.bf16.msra.mxu1 %v2362_v61  ;;  %2109 = vmatprep.subr.bf16.mxu0 %v2108_v62  ;;  %v777_v61 = vld [vmem:[%s3157_s27 + $0xd00] sm:$0xff] }
 0x167   : > { %2365 = vmatprep.subr.bf16.mxu1 %v2364_v2  ;;  %v781_v62 = vld [vmem:[%s3157_s27 + $0xd20] sm:$0xff]  ;;  %v786_v2 = vld [vmem:[%s3157_s27 + $0xd48] sm:$0xff] }
 0x168   : > { %v2130_v6 = vpack.c.bf16 %v781_v62, %v777_v61  ;;  %v823_v61 = vld [vmem:[%s3157_s27 + $0xe70] sm:$0xff]  ;;  %v826_v62 = vld [vmem:[%s3157_s27 + $0xe88] sm:$0xff] }
 0x169   : > { %2111 = vmatpush1.bf16.msra.mxu0 %v2110_v8  ;;  %v2132_v8 = vpack.c.bf16 %v790_v3, %v786_v2  ;;  %v2152_v4 = vpack.c.bf16 %v830_v63, %v826_v62 }
 0x16a   : > { %2367 = vmatpush1.bf16.msra.mxu1 %v2366_v9  ;;  %2113 = vmatprep.subr.bf16.mxu0 %v2112_v10  ;;  %v785_v9 = vld [vmem:[%s3157_s27 + $0xd40] sm:$0xff] }
 0x16b   : > { %2369 = vmatprep.subr.bf16.mxu1 %v2368_v14  ;;  %v789_v10 = vld [vmem:[%s3157_s27 + $0xd60] sm:$0xff]  ;;  %v794_v14 = vld [vmem:[%s3157_s27 + $0xd88] sm:$0xff] }
 0x16c   : > { %1080 = vmatmul.mubr.f32.vlgmr.msra.gmra.mrb[0].mxu0 %v357_v20  ;;  %v2134_v18 = vpack.c.bf16 %v789_v10, %v785_v9  ;;  %v831_v9 = vld [vmem:[%s3157_s27 + $0xeb0] sm:$0xff]  ;;  %v834_v10 = vld [vmem:[%s3157_s27 + $0xec8] sm:$0xff] }
 0x16d   : > { %2115 = vmatpush1.bf16.msra.mxu0 %v2114_v21  ;;  %1364 = vmatmul.mubr.f32.vlgmr.msra.gmra.mrb[0].mxu1 %v357_v20  ;;  %v2136_v20 = vpack.c.bf16 %v798_v15, %v794_v14  ;;  %v793_v21 = vld [vmem:[%s3157_s27 + $0xd80] sm:$0xff]  ;;  %v2156_v16 = vpack.c.bf16 %v838_v11, %v834_v10  ;;  %v351_v10 = vld [vmem:[#allocation2 + $0x10] sm:$0xff]  ;;  %v350_v11 = vld [vmem:[#allocation2 + $0x8] sm:$0xff] }
 0x16e   : > { %2371 = vmatpush1.bf16.msra.mxu1 %v2370_v22  ;;  %2117 = vmatprep.subr.bf16.mxu0 %v2116_v23  ;;  %v797_v22 = vld [vmem:[%s3157_s27 + $0xda0] sm:$0xff]  ;;  %v795_v23 = vld [vmem:[%s3157_s27 + $0xd90] sm:$0xff] }
 0x16f   : > { %2373 = vmatprep.subr.bf16.mxu1 %v2372_v27  ;;  %1150 = vmatprep.mubr.f32.mxu0 %v360_v33  ;;  %v806_v27 = vld [vmem:[%s3157_s27 + $0xde8] sm:$0xff]  ;;  %v2138_v30 = vpack.c.bf16 %v797_v22, %v793_v21  ;;  %v2394_v31 = vpack.c.bf16 %v799_v25, %v795_v23  ;;  %v839_v21 = vld [vmem:[%s3157_s27 + $0xef0] sm:$0xff]  ;;  %v848_v25 = vld [vmem:[%s3157_s27 + $0xf38] sm:$0xff] }
 0x170   : > { %1434 = vmatprep.mubr.f32.mxu1 %v360_v33  ;;  %v2140_v32 = vpack.c.bf16 %v806_v27, %v802_v26  ;;  %v801_v33 = vld [vmem:[%s3157_s27 + $0xdc0] sm:$0xff]  ;;  %v842_v22 = vld [vmem:[%s3157_s27 + $0xf08] sm:$0xff] }
 0x171   : > { %2119 = vmatpush1.bf16.msra.mxu0 %v2118_v34  ;;  %v805_v34 = vld [vmem:[%s3157_s27 + $0xde0] sm:$0xff]  ;;  %v846_v23 = vld [vmem:[%s3157_s27 + $0xf28] sm:$0xff] }
 0x172   : > { %2375 = vmatpush1.bf16.msra.mxu1 %v2374_v35  ;;  %2121 = vmatprep.subr.bf16.mxu0 %v2120_v36  ;;  %v803_v35 = vld [vmem:[%s3157_s27 + $0xdd0] sm:$0xff]  ;;  %v2396_v36 = vpack.c.bf16 %v808_v29, %v804_v28  ;;  %v2142_v42 = vpack.c.bf16 %v805_v34, %v801_v33  ;;  %v2160_v28 = vpack.c.bf16 %v846_v23, %v842_v22  ;;  %v841_v29 = vld [vmem:[%s3157_s27 + $0xf00] sm:$0xff]  ;;  %v850_v34 = vld [vmem:[%s3157_s27 + $0xf48] sm:$0xff] }
 0x173   : > { %2377 = vmatprep.subr.bf16.mxu1 %v2376_v40  ;;  %v812_v40 = vld [vmem:[%s3157_s27 + $0xe18] sm:$0xff]  ;;  %v2398_v43 = vpack.c.bf16 %v807_v37, %v803_v35  ;;  %v847_v33 = vld [vmem:[%s3157_s27 + $0xf30] sm:$0xff]  ;;  %v854_v35 = vld [vmem:[%s3157_s27 + $0xf68] sm:$0xff] }
 0x174   : > { %v856_v37 = vld [vmem:[%s3157_s27 + $0xf78] sm:$0xff]  ;;  %v1483_v23 = vld [vmem:[#allocation8] sm:$0xff] (!%p1913_p4) }
 0x175   : > { %2123 = vmatpush1.bf16.msra.mxu0 %v2122_v46  ;;  %v813_v46 = vld [vmem:[%s3157_s27 + $0xe20] sm:$0xff] }
 0x176   : > { %2379 = vmatpush1.bf16.msra.mxu1 %v2378_v47  ;;  %2125 = vmatprep.subr.bf16.mxu0 %v2124_v48  ;;  %v811_v47 = vld [vmem:[%s3157_s27 + $0xe10] sm:$0xff]  ;;  %v2400_v48 = vpack.c.bf16 %v816_v41, %v812_v40  ;;  %v2146_v54 = vpack.c.bf16 %v813_v46, %v809_v45  ;;  %v2164_v40 = vpack.c.bf16 %v854_v35, %v850_v34  ;;  %v849_v41 = vld [vmem:[%s3157_s27 + $0xf40] sm:$0xff]  ;;  %v858_v46 = vld [vmem:[%s3157_s27 + $0xf88] sm:$0xff] }
 0x177   : > { %2381 = vmatprep.subr.bf16.mxu1 %v2380_v52  ;;  %v820_v52 = vld [vmem:[%s3157_s27 + $0xe58] sm:$0xff]  ;;  %v2402_v55 = vpack.c.bf16 %v815_v49, %v811_v47  ;;  %v855_v45 = vld [vmem:[%s3157_s27 + $0xf70] sm:$0xff]  ;;  %v862_v47 = vld [vmem:[%s3157_s27 + $0xfa8] sm:$0xff] }
 0x178   : > { %v864_v49 = vld [vmem:[%s3157_s27 + $0xfb8] sm:$0xff]  ;;  %v1487_v35 = vld [vmem:[#allocation8 + $0x20] sm:$0xff] (!%p1913_p4) }
 0x179   : > { %2127 = vmatpush1.bf16.msra.mxu0 %v2126_v58  ;;  %v821_v58 = vld [vmem:[%s3157_s27 + $0xe60] sm:$0xff] }
 0x17a   : > { %2383 = vmatpush1.bf16.msra.mxu1 %v2382_v59  ;;  %2129 = vmatprep.subr.bf16.mxu0 %v2128_v60  ;;  %v819_v59 = vld [vmem:[%s3157_s27 + $0xe50] sm:$0xff]  ;;  %v2404_v60 = vpack.c.bf16 %v824_v53, %v820_v52  ;;  %v2150_v2 = vpack.c.bf16 %v821_v58, %v817_v57  ;;  %v2168_v52 = vpack.c.bf16 %v862_v47, %v858_v46  ;;  %v857_v53 = vld [vmem:[%s3157_s27 + $0xf80] sm:$0xff]  ;;  %v866_v58 = vld [vmem:[%s3157_s27 + $0xfc8] sm:$0xff] }
 0x17b   : > { %2385 = vmatprep.subr.bf16.mxu1 %v2384_v0  ;;  %v828_v0 = vld [vmem:[%s3157_s27 + $0xe98] sm:$0xff]  ;;  %v2406_v3 = vpack.c.bf16 %v823_v61, %v819_v59  ;;  %v863_v57 = vld [vmem:[%s3157_s27 + $0xfb0] sm:$0xff]  ;;  %v870_v59 = vld [vmem:[%s3157_s27 + $0xfe8] sm:$0xff] }
 0x17c   : > { %v872_v61 = vld [vmem:[%s3157_s27 + $0xff8] sm:$0xff] }
 0x17d   : > { %2131 = vmatpush1.bf16.msra.mxu0 %v2130_v6  ;;  %v829_v6 = vld [vmem:[%s3157_s27 + $0xea0] sm:$0xff] }
 0x17e   : > { %2387 = vmatpush1.bf16.msra.mxu1 %v2386_v7  ;;  %2133 = vmatprep.subr.bf16.mxu0 %v2132_v8  ;;  %v827_v7 = vld [vmem:[%s3157_s27 + $0xe90] sm:$0xff]  ;;  %v2408_v8 = vpack.c.bf16 %v832_v1, %v828_v0  ;;  %v2154_v14 = vpack.c.bf16 %v829_v6, %v825_v5  ;;  %v2172_v0 = vpack.c.bf16 %v870_v59, %v866_v58  ;;  %v865_v1 = vld [vmem:[%s3157_s27 + $0xfc0] sm:$0xff] }
 0x17f   : > { %2389 = vmatprep.subr.bf16.mxu1 %v2388_v12  ;;  %v836_v12 = vld [vmem:[%s3157_s27 + $0xed8] sm:$0xff]  ;;  %v2410_v15 = vpack.c.bf16 %v831_v9, %v827_v7  ;;  %v871_v5 = vld [vmem:[%s3157_s27 + $0xff0] sm:$0xff]  ;;  %v349_v9 = vld [vmem:[#allocation2] sm:$0xff] }
 0x180   : > { %v1486_v22 = vld [vmem:[#allocation8 + $0x18] sm:$0xff] (!%p1913_p4)  ;;  %v1495_v58 = vld [vmem:[#allocation8 + $0x60] sm:$0xff] (!%p1913_p4) }
 0x181   : > { %2135 = vmatpush1.bf16.msra.mxu0 %v2134_v18  ;;  %v837_v18 = vld [vmem:[%s3157_s27 + $0xee0] sm:$0xff] }
 0x182   : > { %2391 = vmatpush1.bf16.msra.mxu1 %v2390_v19  ;;  %2137 = vmatprep.subr.bf16.mxu0 %v2136_v20  ;;  %v835_v19 = vld [vmem:[%s3157_s27 + $0xed0] sm:$0xff]  ;;  %v2412_v20 = vpack.c.bf16 %v840_v13, %v836_v12  ;;  %v2158_v26 = vpack.c.bf16 %v837_v18, %v833_v17  ;;  %v352_v13 = vld [vmem:[#allocation2 + $0x18] sm:$0xff] }
 0x183   : > { %2393 = vmatprep.subr.bf16.mxu1 %v2392_v24  ;;  %v844_v24 = vld [vmem:[%s3157_s27 + $0xf18] sm:$0xff]  ;;  %v2414_v27 = vpack.c.bf16 %v839_v21, %v835_v19  ;;  %v1484_v21 = vld [vmem:[#allocation8 + $0x8] sm:$0xff] (!%p1913_p4) }
 0x184   : > { %v1490_v34 = vld [vmem:[#allocation8 + $0x38] sm:$0xff] (!%p1913_p4) }
 0x185   : > { %2139 = vmatpush1.bf16.msra.mxu0 %v2138_v30  ;;  %v845_v30 = vld [vmem:[%s3157_s27 + $0xf20] sm:$0xff] }
 0x186   : > { %2395 = vmatpush1.bf16.msra.mxu1 %v2394_v31  ;;  %2141 = vmatprep.subr.bf16.mxu0 %v2140_v32  ;;  %v843_v31 = vld [vmem:[%s3157_s27 + $0xf10] sm:$0xff]  ;;  %v2416_v32 = vpack.c.bf16 %v848_v25, %v844_v24  ;;  %v2162_v38 = vpack.c.bf16 %v845_v30, %v841_v29  ;;  %v2432_v24 = vpack.c.bf16 (!%p1913_p4), %v1486_v22, %v1484_v21  ;;  %v1547_v30 = vld [vmem:[#allocation8 + $0x200] sm:$0xff] (!%p1913_p4) }
 0x187   : > { %2397 = vmatprep.subr.bf16.mxu1 %v2396_v36  ;;  %v852_v36 = vld [vmem:[%s3157_s27 + $0xf58] sm:$0xff]  ;;  %v2418_v39 = vpack.c.bf16 %v847_v33, %v843_v31  ;;  %v1503_v22 = vld [vmem:[#allocation8 + $0xa0] sm:$0xff] (!%p1913_p4) }
 0x188   : > { %v1485_v25 = vld [vmem:[#allocation8 + $0x10] sm:$0xff] (!%p1913_p4) }
 0x189   : > { %2143 = vmatpush1.bf16.msra.mxu0 %v2142_v42  ;;  %v853_v42 = vld [vmem:[%s3157_s27 + $0xf60] sm:$0xff]  ;;  %v1549_v31 = vld [vmem:[#allocation8 + $0x210] sm:$0xff] (!%p1913_p4) }
 0x18a   : > { %2399 = vmatpush1.bf16.msra.mxu1 %v2398_v43  ;;  %2145 = vmatprep.subr.bf16.mxu0 %v2144_v44  ;;  %v851_v43 = vld [vmem:[%s3157_s27 + $0xf50] sm:$0xff]  ;;  %v2420_v44 = vpack.c.bf16 %v856_v37, %v852_v36  ;;  %v2166_v50 = vpack.c.bf16 %v853_v42, %v849_v41  ;;  %v2498_v33 = vpack.c.bf16 (!%p1913_p4), %v1549_v31, %v1547_v30  ;;  %v1551_v41 = vld [vmem:[#allocation8 + $0x220] sm:$0xff] (!%p1913_p4)  ;;  %v1574_v30 = vld [vmem:[#allocation8 + $0x2d8] sm:$0xff] (!%p1913_p4) }
 0x18b   : > { %2401 = vmatprep.subr.bf16.mxu1 %v2400_v48  ;;  %v860_v48 = vld [vmem:[%s3157_s27 + $0xf98] sm:$0xff]  ;;  %v2422_v51 = vpack.c.bf16 %v855_v45, %v851_v43 }
 0x18c   : > { %v1489_v36 = vld [vmem:[#allocation8 + $0x30] sm:$0xff] (!%p1913_p4)  ;;  %v1494_v45 = vld [vmem:[#allocation8 + $0x58] sm:$0xff] (!%p1913_p4) }
 0x18d   : > { %2147 = vmatpush1.bf16.msra.mxu0 %v2146_v54  ;;  %v861_v54 = vld [vmem:[%s3157_s27 + $0xfa0] sm:$0xff]  ;;  %v1553_v43 = vld [vmem:[#allocation8 + $0x230] sm:$0xff] (!%p1913_p4) }
 0x18e   : > { %2403 = vmatpush1.bf16.msra.mxu1 %v2402_v55  ;;  %2149 = vmatprep.subr.bf16.mxu0 %v2148_v56  ;;  %v859_v55 = vld [vmem:[%s3157_s27 + $0xf90] sm:$0xff]  ;;  %v2424_v56 = vpack.c.bf16 %v864_v49, %v860_v48  ;;  %v2170_v62 = vpack.c.bf16 %v861_v54, %v857_v53  ;;  %v2502_v46 = vpack.c.bf16 (!%p1913_p4), %v1553_v43, %v1551_v41  ;;  %v1491_v48 = vld [vmem:[#allocation8 + $0x40] sm:$0xff] (!%p1913_p4) }
 0x18f   : > { %2405 = vmatprep.subr.bf16.mxu1 %v2404_v60  ;;  %v868_v60 = vld [vmem:[%s3157_s27 + $0xfd8] sm:$0xff]  ;;  %v2426_v63 = vpack.c.bf16 %v863_v57, %v859_v55  ;;  %v1576_v41 = vld [vmem:[#allocation8 + $0x2e8] sm:$0xff] (!%p1913_p4) }
 0x190   : > { %v1493_v49 = vld [vmem:[#allocation8 + $0x50] sm:$0xff] (!%p1913_p4)  ;;  %v1498_v57 = vld [vmem:[#allocation8 + $0x78] sm:$0xff] (!%p1913_p4) }
 0x191   : > { %2151 = vmatpush1.bf16.msra.mxu0 %v2150_v2  ;;  %v869_v2 = vld [vmem:[%s3157_s27 + $0xfe0] sm:$0xff]  ;;  %v1557_v53 = vld [vmem:[#allocation8 + $0x250] sm:$0xff] (!%p1913_p4)  ;;  %v2442_v54 = vpack.c.bf16 (!%p1913_p4), %v1493_v49, %v1491_v48 }
 0x192   : > { %2407 = vmatpush1.bf16.msra.mxu1 %v2406_v3  ;;  %2153 = vmatprep.subr.bf16.mxu0 %v2152_v4  ;;  %v2428_v3 = vpack.c.bf16 %v872_v61, %v868_v60  ;;  %v867_v4 = vld [vmem:[%s3157_s27 + $0xfd0] sm:$0xff]  ;;  %v2174_v6 = vpack.c.bf16 %v869_v2, %v865_v1  ;;  %v1559_v1 = vld [vmem:[#allocation8 + $0x260] sm:$0xff] (!%p1913_p4) }
 0x193   : > { %2409 = vmatprep.subr.bf16.mxu1 %v2408_v8  ;;  %v2430_v7 = vpack.c.bf16 %v871_v5, %v867_v4  ;;  %v359_v8 = vld [vmem:[%s3149_s28 + $0x30] sm:$0xff]  ;;  %v1502_v4 = vld [vmem:[#allocation8 + $0x98] sm:$0xff] (!%p1913_p4)  ;;  %v1575_v48 = vld [vmem:[#allocation8 + $0x2e0] sm:$0xff] (!%p1913_p4) }
 0x194   : > { %v1497_v61 = vld [vmem:[#allocation8 + $0x70] sm:$0xff] (!%p1913_p4) }
 0x195   : > { %2155 = vmatpush1.bf16.msra.mxu0 %v2154_v14  ;;  %v1561_v2 = vld [vmem:[#allocation8 + $0x270] sm:$0xff] (!%p1913_p4)  ;;  %v2446_v5 = vpack.c.bf16 (!%p1913_p4), %v1497_v61, %v1495_v58  ;;  %v1515_v58 = vld [vmem:[#allocation8 + $0x100] sm:$0xff] (!%p1913_p4) }
 0x196   : > { %2411 = vmatpush1.bf16.msra.mxu1 %v2410_v15  ;;  %2157 = vmatprep.subr.bf16.mxu0 %v2156_v16 }
 0x197   : > { %2413 = vmatprep.subr.bf16.mxu1 %v2412_v20 }
 0x199   : > { %2159 = vmatpush1.bf16.msra.mxu0 %v2158_v26  ;;  %v1548_v26 = vld [vmem:[#allocation8 + $0x208] sm:$0xff] (!%p1913_p4) }
 0x19a   : > { %2415 = vmatpush1.bf16.msra.mxu1 %v2414_v27  ;;  %2161 = vmatprep.subr.bf16.mxu0 %v2160_v28  ;;  %v1550_v27 = vld [vmem:[#allocation8 + $0x218] sm:$0xff] (!%p1913_p4)  ;;  %v2434_v28 = vpack.c.bf16 (!%p1913_p4), %v1485_v25, %v1483_v23  ;;  %v1505_v23 = vld [vmem:[#allocation8 + $0xb0] sm:$0xff] (!%p1913_p4) }
 0x19b   : > { %2417 = vmatprep.subr.bf16.mxu1 %v2416_v32  ;;  %v2496_v29 = vpack.c.bf16 (!%p1913_p4), %v1550_v27, %v1548_v26  ;;  %v1488_v32 = vld [vmem:[#allocation8 + $0x28] sm:$0xff] (!%p1913_p4)  ;;  %v1569_v26 = vld [vmem:[#allocation8 + $0x2b0] sm:$0xff] (!%p1913_p4)  ;;  %v2454_v31 = vpack.c.bf16 (!%p1913_p4), %v1505_v23, %v1503_v22  ;;  %v1587_v22 = vld [vmem:[#allocation8 + $0x340] sm:$0xff] (!%p1913_p4) }
 0x19c   : > { %v2436_v37 = vpack.c.bf16 (!%p1913_p4), %v1490_v34, %v1488_v32  ;;  %v1508_v27 = vld [vmem:[#allocation8 + $0xc8] sm:$0xff] (!%p1913_p4)  ;;  %v1507_v34 = vld [vmem:[#allocation8 + $0xc0] sm:$0xff] (!%p1913_p4) }
 0x19d   : > { %2163 = vmatpush1.bf16.msra.mxu0 %v2162_v38  ;;  %v2438_v38 = vpack.c.bf16 (!%p1913_p4), %v1489_v36, %v1487_v35  ;;  %v1509_v35 = vld [vmem:[#allocation8 + $0xd0] sm:$0xff] (!%p1913_p4)  ;;  %v1571_v36 = vld [vmem:[#allocation8 + $0x2c0] sm:$0xff] (!%p1913_p4) }
 0x19e   : > { %2419 = vmatpush1.bf16.msra.mxu1 %v2418_v39  ;;  %2165 = vmatprep.subr.bf16.mxu0 %v2164_v40  ;;  %v1552_v39 = vld [vmem:[#allocation8 + $0x228] sm:$0xff] (!%p1913_p4)  ;;  %v1554_v40 = vld [vmem:[#allocation8 + $0x238] sm:$0xff] (!%p1913_p4)  ;;  %v2458_v43 = vpack.c.bf16 (!%p1913_p4), %v1509_v35, %v1507_v34 }
 0x19f   : > { %2421 = vmatprep.subr.bf16.mxu1 %v2420_v44  ;;  %v2500_v42 = vpack.c.bf16 (!%p1913_p4), %v1554_v40, %v1552_v39  ;;  %v1492_v44 = vld [vmem:[#allocation8 + $0x48] sm:$0xff] (!%p1913_p4)  ;;  %v1514_v40 = vld [vmem:[#allocation8 + $0xf8] sm:$0xff] (!%p1913_p4) }
 0x1a0   : > { %v2440_v47 = vpack.c.bf16 (!%p1913_p4), %v1494_v45, %v1492_v44  ;;  %v1512_v39 = vld [vmem:[#allocation8 + $0xe8] sm:$0xff] (!%p1913_p4) }
 0x1a1   : > { %2167 = vmatpush1.bf16.msra.mxu0 %v2166_v50  ;;  %v1556_v50 = vld [vmem:[#allocation8 + $0x248] sm:$0xff] (!%p1913_p4)  ;;  %v2460_v45 = vpack.c.bf16 (!%p1913_p4), %v1514_v40, %v1512_v39  ;;  %v1534_v40 = vld [vmem:[#allocation8 + $0x198] sm:$0xff] (!%p1913_p4) }
 0x1a2   : > { %2423 = vmatpush1.bf16.msra.mxu1 %v2422_v51  ;;  %2169 = vmatprep.subr.bf16.mxu0 %v2168_v52  ;;  %v1558_v51 = vld [vmem:[#allocation8 + $0x258] sm:$0xff] (!%p1913_p4)  ;;  %v1555_v52 = vld [vmem:[#allocation8 + $0x240] sm:$0xff] (!%p1913_p4) }
 0x1a3   : > { %2425 = vmatprep.subr.bf16.mxu1 %v2424_v56  ;;  %v2504_v55 = vpack.c.bf16 (!%p1913_p4), %v1558_v51, %v1556_v50  ;;  %v1496_v56 = vld [vmem:[#allocation8 + $0x68] sm:$0xff] (!%p1913_p4)  ;;  %v2506_v59 = vpack.c.bf16 (!%p1913_p4), %v1557_v53, %v1555_v52  ;;  %v1577_v50 = vld [vmem:[#allocation8 + $0x2f0] sm:$0xff] (!%p1913_p4)  ;;  %v1518_v52 = vld [vmem:[#allocation8 + $0x118] sm:$0xff] (!%p1913_p4) }
 0x1a4   : > { %v2444_v60 = vpack.c.bf16 (!%p1913_p4), %v1498_v57, %v1496_v56  ;;  %v1516_v51 = vld [vmem:[#allocation8 + $0x108] sm:$0xff] (!%p1913_p4)  ;;  %v2526_v56 = vpack.c.bf16 (!%p1913_p4), %v1577_v50, %v1575_v48 }
 0x1a5   : > { %2171 = vmatpush1.bf16.msra.mxu0 %v2170_v62  ;;  %v1560_v62 = vld [vmem:[#allocation8 + $0x268] sm:$0xff] (!%p1913_p4)  ;;  %v2464_v57 = vpack.c.bf16 (!%p1913_p4), %v1518_v52, %v1516_v51  ;;  %v1531_v51 = vld [vmem:[#allocation8 + $0x180] sm:$0xff] (!%p1913_p4)  ;;  %v1533_v52 = vld [vmem:[#allocation8 + $0x190] sm:$0xff] (!%p1913_p4) }
 0x1a6   : > { %2427 = vmatpush1.bf16.msra.mxu1 %v2426_v63  ;;  %2173 = vmatprep.subr.bf16.mxu0 %v2172_v0  ;;  %v1562_v63 = vld [vmem:[#allocation8 + $0x278] sm:$0xff] (!%p1913_p4)  ;;  %v1580_v53 = vld [vmem:[#allocation8 + $0x308] sm:$0xff] (!%p1913_p4) }
 0x1a7   : > { %2429 = vmatprep.subr.bf16.mxu1 %v2428_v3  ;;  %v2508_v0 = vpack.c.bf16 (!%p1913_p4), %v1562_v63, %v1560_v62  ;;  %v1500_v3 = vld [vmem:[#allocation8 + $0x88] sm:$0xff] (!%p1913_p4)  ;;  %v1581_v62 = vld [vmem:[#allocation8 + $0x310] sm:$0xff] (!%p1913_p4) }
 0x1a8   : > { %v1520_v63 = vld [vmem:[#allocation8 + $0x128] sm:$0xff] (!%p1913_p4) }
 0x1a9   : > { %2175 = vmatpush1.bf16.msra.mxu0 %v2174_v6  ;;  %v1564_v6 = vld [vmem:[#allocation8 + $0x288] sm:$0xff] (!%p1913_p4) }
 0x1aa   : > { %2431 = vmatpush1.bf16.msra.mxu1 %v2430_v7  ;;  %2497 = vmatprep.subr.bf16.mxu0 (!%p1913_p4), %v2496_v29  ;;  %v1566_v7 = vld [vmem:[#allocation8 + $0x298] sm:$0xff] (!%p1913_p4)  ;;  %v1572_v29 = vld [vmem:[#allocation8 + $0x2c8] sm:$0xff] (!%p1913_p4) }
 0x1ab   : > { %2433 = vmatprep.subr.bf16.mxu1 (!%p1913_p4), %v2432_v24  ;;  %v1567_v24 = vld [vmem:[#allocation8 + $0x2a0] sm:$0xff] (!%p1913_p4) }
 0x1ac   : > { %1151 = vmatmul.mubr.f32.vlgmr.msra.gmra.mrb[0].mxu0 %v359_v8  ;;  %v2518_v32 = vpack.c.bf16 (!%p1913_p4), %v1569_v26, %v1567_v24  ;;  %v1589_v24 = vld [vmem:[#allocation8 + $0x350] sm:$0xff] (!%p1913_p4)  ;;  %v1530_v26 = vld [vmem:[#allocation8 + $0x178] sm:$0xff] (!%p1913_p4) }
 0x1ad   : > { %1435 = vmatmul.mubr.f32.vlgmr.msra.gmra.mrb[0].mxu1 %v359_v8  ;;  %2499 = vmatpush1.bf16.msra.mxu0 (!%p1913_p4), %v2498_v33  ;;  %v2510_v8 = vpack.c.bf16 (!%p1913_p4), %v1561_v2, %v1559_v1  ;;  %v1584_v1 = vld [vmem:[#allocation8 + $0x328] sm:$0xff] (!%p1913_p4)  ;;  %v1586_v2 = vld [vmem:[#allocation8 + $0x338] sm:$0xff] (!%p1913_p4)  ;;  %v2538_v34 = vpack.c.bf16 (!%p1913_p4), %v1589_v24, %v1587_v22 }
 0x1ae   : > { %2435 = vmatpush1.bf16.msra.mxu1 (!%p1913_p4), %v2434_v28  ;;  %2501 = vmatprep.subr.bf16.mxu0 (!%p1913_p4), %v2500_v42  ;;  %v1510_v28 = vld [vmem:[#allocation8 + $0xd8] sm:$0xff] (!%p1913_p4) }
 0x1af   : > { %2437 = vmatprep.subr.bf16.mxu1 (!%p1913_p4), %v2436_v37  ;;  %v2456_v33 = vpack.c.bf16 (!%p1913_p4), %v1510_v28, %v1508_v27  ;;  %v2520_v37 = vpack.c.bf16 (!%p1913_p4), %v1574_v30, %v1572_v29  ;;  %v1578_v42 = vld [vmem:[#allocation8 + $0x2f8] sm:$0xff] (!%p1913_p4)  ;;  %v1592_v27 = vld [vmem:[#allocation8 + $0x368] sm:$0xff] (!%p1913_p4)  ;;  %v1527_v30 = vld [vmem:[#allocation8 + $0x160] sm:$0xff] (!%p1913_p4) }
 0x1b0   : > { %v2524_v49 = vpack.c.bf16 (!%p1913_p4), %v1578_v42, %v1576_v41  ;;  %v1594_v28 = vld [vmem:[#allocation8 + $0x378] sm:$0xff] (!%p1913_p4)  ;;  %v1596_v41 = vld [vmem:[#allocation8 + $0x388] sm:$0xff] (!%p1913_p4) }
 0x1b1   : > { %2503 = vmatpush1.bf16.msra.mxu0 (!%p1913_p4), %v2502_v46  ;;  %v1511_v46 = vld [vmem:[#allocation8 + $0xe0] sm:$0xff] (!%p1913_p4)  ;;  %v2540_v39 = vpack.c.bf16 (!%p1913_p4), %v1594_v28, %v1592_v27  ;;  %v1598_v42 = vld [vmem:[#allocation8 + $0x398] sm:$0xff] (!%p1913_p4) }
 0x1b2   : > { %2439 = vmatpush1.bf16.msra.mxu1 (!%p1913_p4), %v2438_v38  ;;  %2505 = vmatprep.subr.bf16.mxu0 (!%p1913_p4), %v2504_v55  ;;  %v1573_v38 = vld [vmem:[#allocation8 + $0x2d0] sm:$0xff] (!%p1913_p4)  ;;  %v1610_v22 = vld [vmem:[#allocation8 + $0x3f8] sm:$0xff] (!%p1913_p4)  ;;  %v1543_v28 = vld [vmem:[#allocation8 + $0x1e0] sm:$0xff] (!%p1913_p4) }
 0x1b3   : > { %2441 = vmatprep.subr.bf16.mxu1 (!%p1913_p4), %v2440_v47  ;;  %v2522_v44 = vpack.c.bf16 (!%p1913_p4), %v1573_v38, %v1571_v36  ;;  %v1513_v47 = vld [vmem:[#allocation8 + $0xf0] sm:$0xff] (!%p1913_p4)  ;;  %v1591_v36 = vld [vmem:[#allocation8 + $0x360] sm:$0xff] (!%p1913_p4)  ;;  %v1532_v38 = vld [vmem:[#allocation8 + $0x188] sm:$0xff] (!%p1913_p4) }
 0x1b4   : > { %v2462_v55 = vpack.c.bf16 (!%p1913_p4), %v1513_v47, %v1511_v46  ;;  %v2480_v50 = vpack.c.bf16 (!%p1913_p4), %v1534_v40, %v1532_v38 }
 0x1b5   : > { %2507 = vmatpush1.bf16.msra.mxu0 (!%p1913_p4), %v2506_v59  ;;  %v1517_v59 = vld [vmem:[#allocation8 + $0x110] sm:$0xff] (!%p1913_p4) }
 0x1b6   : > { %2443 = vmatpush1.bf16.msra.mxu1 (!%p1913_p4), %v2442_v54  ;;  %2509 = vmatprep.subr.bf16.mxu0 (!%p1913_p4), %v2508_v0  ;;  %v1582_v54 = vld [vmem:[#allocation8 + $0x318] sm:$0xff] (!%p1913_p4) }
 0x1b7   : > { %2445 = vmatprep.subr.bf16.mxu1 (!%p1913_p4), %v2444_v60  ;;  %v1579_v60 = vld [vmem:[#allocation8 + $0x300] sm:$0xff] (!%p1913_p4)  ;;  %v2528_v61 = vpack.c.bf16 (!%p1913_p4), %v1582_v54, %v1580_v53  ;;  %v1522_v0 = vld [vmem:[#allocation8 + $0x138] sm:$0xff] (!%p1913_p4)  ;;  %v2544_v54 = vpack.c.bf16 (!%p1913_p4), %v1598_v42, %v1596_v41 }
 0x1b8   : > { %v1595_v53 = vld [vmem:[#allocation8 + $0x380] sm:$0xff] (!%p1913_p4) }
 0x1b9   : > { %2511 = vmatpush1.bf16.msra.mxu0 (!%p1913_p4), %v2510_v8  ;;  %v1521_v8 = vld [vmem:[#allocation8 + $0x130] sm:$0xff] (!%p1913_p4)  ;;  %v1611_v42 = vld [vmem:[#allocation10] sm:$0x3] (!%p1913_p4) }
 0x1ba   : > { %2447 = vmatpush1.bf16.msra.mxu1 (!%p1913_p4), %v2446_v5  ;;  %v2530_v5 = vpack.c.bf16 (!%p1913_p4), %v1581_v62, %v1579_v60  ;;  %v1600_v60 = vld [vmem:[#allocation8 + $0x3a8] sm:$0xff] (!%p1913_p4)  ;;  %v2482_v62 = vpack.c.bf16 (!%p1913_p4), %v1533_v52, %v1531_v51 }
 0x27e   : > { %1452 = sbr.rel (%p1913_p4) target bundleno = 909 (0x38d), region = 68 }
 0x27f   : > { %v1152_v12 = vpop.f32.mrb[0].mxu0 }
 0x280   : > { %v1441_v14 = vadd.f32 %v1152_v12, %v349_v9  ;;  %v1436_v15 = vpop.f32.mrb[0].mxu1  ;;  %v1154_v16 = vpop.f32.mrb[1].mxu0  ;;  %v2448_v9 = vpack.c.bf16 (!%p1913_p4), %v1502_v4, %v1500_v3  ;;  %v1563_v12 = vld [vmem:[#allocation8 + $0x280] sm:$0xff] (!%p1913_p4)  ;;  %v2466_v3 = vpack.c.bf16 (!%p1913_p4), %v1517_v59, %v1515_v58  ;;  %v1459_v4 = vlaneseq (!%p1913_p4) }
 0x281   : > { %v1443_v17 = vadd.f32 %v1436_v15, %v351_v10  ;;  %v1442_v18 = vadd.f32 %v1154_v16, %v350_v11  ;;  %v1438_v19 = vpop.f32.mrb[1].mxu1  ;;  %v1499_v10 = vld [vmem:[#allocation8 + $0x80] sm:$0xff] (!%p1913_p4)  ;;  %v1501_v11 = vld [vmem:[#allocation8 + $0x90] sm:$0xff] (!%p1913_p4)  ;;  %v1504_v15 = vld [vmem:[#allocation8 + $0xa8] sm:$0xff] (!%p1913_p4) }
 0x282   : > { %1445 = vst [vmem:[#allocation2] sm:$0xff] %v1441_v14  ;;  %v1444_v20 = vadd.f32 %v1438_v19, %v352_v13  ;;  %v2512_v13 = vpack.c.bf16 (!%p1913_p4), %v1566_v7, %v1564_v6  ;;  %v1565_v14 = vld [vmem:[#allocation8 + $0x290] sm:$0xff] (!%p1913_p4)  ;;  %v1506_v16 = vld [vmem:[#allocation8 + $0xb8] sm:$0xff] (!%p1913_p4)  ;;  %v2450_v19 = vpack.c.bf16 (!%p1913_p4), %v1501_v11, %v1499_v10  ;;  %2449 = vmatprep.subr.bf16.mxu1 (!%p1913_p4), %v2448_v9  ;;  %v1519_v7 = vld [vmem:[#allocation8 + $0x120] sm:$0xff] (!%p1913_p4) }
 0x283   : > { %1447 = vst [vmem:[#allocation2 + $0x10] sm:$0xff] %v1443_v17  ;;  %1446 = vst [vmem:[#allocation2 + $0x8] sm:$0xff] %v1442_v18  ;;  %v1568_v17 = vld [vmem:[#allocation8 + $0x2a8] sm:$0xff] (!%p1913_p4)  ;;  %v1570_v18 = vld [vmem:[#allocation8 + $0x2b8] sm:$0xff] (!%p1913_p4)  ;;  %v2452_v21 = vpack.c.bf16 (!%p1913_p4), %v1506_v16, %v1504_v15  ;;  %v2468_v6 = vpack.c.bf16 (!%p1913_p4), %v1522_v0, %v1520_v63  ;;  %v2532_v10 = vpack.c.bf16 (!%p1913_p4), %v1586_v2, %v1584_v1 }
 0x284   : > { %1448 = vst [vmem:[#allocation2 + $0x18] sm:$0xff] %v1444_v20  ;;  %v2514_v20 = vpack.c.bf16 (!%p1913_p4), %v1565_v14, %v1563_v12  ;;  %2513 = vmatprep.subr.bf16.mxu0 (!%p1913_p4), %v2512_v13  ;;  %v2516_v25 = vpack.c.bf16 (!%p1913_p4), %v1570_v18, %v1568_v17  ;;  %2451 = vmatpush1.bf16.msra.mxu1 (!%p1913_p4), %v2450_v19  ;;  %v1583_v9 = vld [vmem:[#allocation8 + $0x320] sm:$0xff] (!%p1913_p4)  ;;  %v1585_v11 = vld [vmem:[#allocation8 + $0x330] sm:$0xff] (!%p1913_p4)  ;;  %v1524_v12 = vld [vmem:[#allocation8 + $0x148] sm:$0xff] (!%p1913_p4)  ;;  %v3693_v17 = vshrl.u32 (!%p1913_p4), %v1459_v4, 7 }
 0x285   : > { %2453 = vmatprep.subr.bf16.mxu1 %v2452_v21  ;;  %v1526_v13 = vld [vmem:[#allocation8 + $0x158] sm:$0xff]  ;;  %v1588_v14 = vld [vmem:[#allocation8 + $0x348] sm:$0xff]  ;;  %v2470_v16 = vpack.c.bf16 %v1521_v8, %v1519_v7  ;;  %v2534_v18 = vpack.c.bf16 %v1585_v11, %v1583_v9  ;;  %v1525_v21 = vld [vmem:[#allocation8 + $0x150] sm:$0xff] }
 0x286   : > { %2515 = vmatpush1.bf16.msra.mxu0 %v2514_v20  ;;  %v1590_v15 = vld [vmem:[#allocation8 + $0x358] sm:$0xff]  ;;  %v2472_v19 = vpack.c.bf16 %v1526_v13, %v1524_v12  ;;  %v1523_v20 = vld [vmem:[#allocation8 + $0x140] sm:$0xff]  ;;  %v1537_v2 = vld [vmem:[#allocation8 + $0x1b0] sm:$0xff] }
 0x287   : > { %2517 = vmatprep.subr.bf16.mxu0 %v2516_v25  ;;  %v2536_v23 = vpack.c.bf16 %v1590_v15, %v1588_v14  ;;  %v1528_v25 = vld [vmem:[#allocation8 + $0x168] sm:$0xff]  ;;  %v2474_v29 = vpack.c.bf16 %v1525_v21, %v1523_v20  ;;  %v1535_v1 = vld [vmem:[#allocation8 + $0x1a0] sm:$0xff]  ;;  %v1542_v7 = vld [vmem:[#allocation8 + $0x1d8] sm:$0xff] }
 0x288   : > { %2455 = vmatpush1.bf16.msra.mxu1 %v2454_v31  ;;  %v1529_v31 = vld [vmem:[#allocation8 + $0x170] sm:$0xff]  ;;  %v2476_v35 = vpack.c.bf16 %v1530_v26, %v1528_v25  ;;  %v1604_v8 = vld [vmem:[#allocation8 + $0x3c8] sm:$0xff]  ;;  %v1606_v9 = vld [vmem:[#allocation8 + $0x3d8] sm:$0xff]  ;;  %v1469_v25 = vsub.s32 2, %v3693_v17 }
 0x289   : > { %2457 = vmatprep.subr.bf16.mxu1 %v2456_v33  ;;  %v1473_v33 = vsub.s32 3, %v3693_v17  ;;  %v2478_v46 = vpack.c.bf16 %v1529_v31, %v1527_v30  ;;  %v1539_v13 = vld [vmem:[#allocation8 + $0x1c0] sm:$0xff]  ;;  %v1541_v14 = vld [vmem:[#allocation8 + $0x1d0] sm:$0xff]  ;;  %v1546_v20 = vld [vmem:[#allocation8 + $0x1f8] sm:$0xff] }
 0x28a   : > { %2519 = vmatpush1.bf16.msra.mxu0 %v2518_v32  ;;  %v1465_v32 = vsub.s32 1, %v3693_v17  ;;  %v1603_v15 = vld [vmem:[#allocation8 + $0x3c0] sm:$0xff]  ;;  %v1608_v21 = vld [vmem:[#allocation8 + $0x3e8] sm:$0xff]  ;;  %v2490_v24 = vpack.c.bf16 %v1541_v14, %v1539_v13 }
 0x28b   : > { %2521 = vmatprep.subr.bf16.mxu0 %v2520_v37  ;;  %v1593_v37 = vld [vmem:[#allocation8 + $0x370] sm:$0xff]  ;;  %v2556_v30 = vpack.c.bf16 %v1610_v22, %v1608_v21  ;;  %v1607_v31 = vld [vmem:[#allocation8 + $0x3e0] sm:$0xff] }
 0x28c   : > { %2459 = vmatpush1.bf16.msra.mxu1 %v2458_v43  ;;  %v1454_v43 = vld [vmem:[#allocation2 + $0x8] sm:$0xff] }
 0x28d   : > { %2461 = vmatprep.subr.bf16.mxu1 %v2460_v45  ;;  %v1456_v45 = vld [vmem:[#allocation2 + $0x18] sm:$0xff] }
 0x28e   : > { %2523 = vmatpush1.bf16.msra.mxu0 %v2522_v44  ;;  %v3697_v44 = vld [vmem:[#allocation7] sm:$0xf] }
 0x28f   : > { %2525 = vmatprep.subr.bf16.mxu0 %v2524_v49  ;;  %v1466_v47 = vrot.slane %v3697_v44, %v1465_v32  ;;  %v1474_v48 = vrot.slane %v3697_v44, %v1473_v33  ;;  %v2542_v49 = vpack.c.bf16 %v1593_v37, %v1591_v36  ;;  %v1609_v33 = vld [vmem:[#allocation8 + $0x3f0] sm:$0xff]  ;;  %v1453_v36 = vld [vmem:[#allocation2] sm:$0xff]  ;;  %v1470_v37 = vrot.slane %v3697_v44, %v1469_v25 }
 0x290   : > { %2463 = vmatpush1.bf16.msra.mxu1 %v2462_v55  ;;  %v1597_v55 = vld [vmem:[#allocation8 + $0x390] sm:$0xff]  ;;  %v2558_v38 = vpack.c.bf16 %v1609_v33, %v1607_v31 }
 0x291   : > { %2465 = vmatprep.subr.bf16.mxu1 %v2464_v57  ;;  %v1538_v57 = vld [vmem:[#allocation8 + $0x1b8] sm:$0xff]  ;;  %v1480_v58 = vadd.f32 %v1466_v47, %v1454_v43  ;;  %v1482_v59 = vadd.f32 %v1474_v48, %v1456_v45  ;;  %v2546_v63 = vpack.c.bf16 %v1597_v55, %v1595_v53  ;;  %v1620_v45 = vrot.slane %v1611_v42, %v1465_v32 }
 0x292   : > { %2527 = vmatpush1.bf16.msra.mxu0 %v2526_v56  ;;  %v1536_v56 = vld [vmem:[#allocation8 + $0x1a8] sm:$0xff] }
 0x293   : > { %2529 = vmatprep.subr.bf16.mxu0 %v2528_v61  ;;  %v1602_v61 = vld [vmem:[#allocation8 + $0x3b8] sm:$0xff]  ;;  %1687 = vmatprep.mubr.f32.mxu1 %v1480_v58  ;;  %v2484_v0 = vpack.c.bf16 %v1538_v57, %v1536_v56 }
 0x294   : > { %2467 = vmatpush1.bf16.msra.mxu1 %v2466_v3  ;;  %v1599_v3 = vld [vmem:[#allocation8 + $0x3a0] sm:$0xff]  ;;  %v2548_v4 = vpack.c.bf16 %v1602_v61, %v1600_v60  ;;  %1758 = vmatprep.mubr.f32.mxu0 %v1482_v59 }
 0x295   : > { %2469 = vmatprep.subr.bf16.mxu1 %v2468_v6  ;;  %v1540_v6 = vld [vmem:[#allocation8 + $0x1c8] sm:$0xff] }
 0x296   : > { %2531 = vmatpush1.bf16.msra.mxu0 %v2530_v5  ;;  %v1601_v5 = vld [vmem:[#allocation8 + $0x3b0] sm:$0xff]  ;;  %v2488_v12 = vpack.c.bf16 %v1542_v7, %v1540_v6 }
 0x297   : > { %2533 = vmatprep.subr.bf16.mxu0 %v2532_v10  ;;  %v2486_v10 = vpack.c.bf16 %v1537_v2, %v1535_v1  ;;  %v2550_v11 = vpack.c.bf16 %v1601_v5, %v1599_v3 }
 0x298   : > { %2471 = vmatpush1.bf16.msra.mxu1 %v2470_v16  ;;  %v2552_v16 = vpack.c.bf16 %v1606_v9, %v1604_v8 }
 0x299   : > { %2473 = vmatprep.subr.bf16.mxu1 %v2472_v19  ;;  %v1544_v19 = vld [vmem:[#allocation8 + $0x1e8] sm:$0xff] }
 0x29a   : > { %2535 = vmatpush1.bf16.msra.mxu0 %v2534_v18  ;;  %v1605_v18 = vld [vmem:[#allocation8 + $0x3d0] sm:$0xff]  ;;  %v2492_v27 = vpack.c.bf16 %v1546_v20, %v1544_v19 }
 0x29b   : > { %2537 = vmatprep.subr.bf16.mxu0 %v2536_v23  ;;  %v1461_v23 = vsub.s32 0, %v3693_v17  ;;  %v2554_v26 = vpack.c.bf16 %v1605_v18, %v1603_v15 }
 0x29c   : > { %2475 = vmatpush1.bf16.msra.mxu1 %v2474_v29  ;;  %v1545_v29 = vld [vmem:[#allocation8 + $0x1f0] sm:$0xff] }
 0x29d   : > { %2477 = vmatprep.subr.bf16.mxu1 %v2476_v35  ;;  %v2494_v35 = vpack.c.bf16 %v1545_v29, %v1543_v28  ;;  %v1616_v43 = vrot.slane %v1611_v42, %v1461_v23 }
 0x29e   : > { %2539 = vmatpush1.bf16.msra.mxu0 %v2538_v34  ;;  %v1462_v34 = vrot.slane %v3697_v44, %v1461_v23 }
 0x29f   : > { %2541 = vmatprep.subr.bf16.mxu0 %v2540_v39  ;;  %v1455_v39 = vld [vmem:[#allocation2 + $0x10] sm:$0xff] }
 0x2a0   : > { %2479 = vmatpush1.bf16.msra.mxu1 %v2478_v46  ;;  %v1479_v40 = vadd.f32 %v1462_v34, %v1453_v36  ;;  %v1481_v41 = vadd.f32 %v1470_v37, %v1455_v39 }
 0x2a1   : > { %2481 = vmatprep.subr.bf16.mxu1 %v2480_v50 }
 0x2a2   : > { %2543 = vmatpush1.bf16.msra.mxu0 %v2542_v49 }
 0x2a3   : > { %2545 = vmatprep.subr.bf16.mxu0 %v2544_v54 }
 0x2a4   : > { %2483 = vmatpush1.bf16.msra.mxu1 %v2482_v62 }
 0x2a5   : > { %2485 = vmatprep.subr.bf16.mxu1 %v2484_v0 }
 0x2a6   : > { %2547 = vmatpush1.bf16.msra.mxu0 %v2546_v63 }
 0x2a7   : > { %2549 = vmatprep.subr.bf16.mxu0 %v2548_v4 }
 0x2a8   : > { %2487 = vmatpush1.bf16.msra.mxu1 %v2486_v10 }
 0x2a9   : > { %2489 = vmatprep.subr.bf16.mxu1 %v2488_v12 }
 0x2aa   : > { %2551 = vmatpush1.bf16.msra.mxu0 %v2550_v11 }
 0x2ab   : > { %2553 = vmatprep.subr.bf16.mxu0 %v2552_v16 }
 0x2ac   : > { %2491 = vmatpush1.bf16.msra.mxu1 %v2490_v24 }
 0x2ad   : > { %2493 = vmatprep.subr.bf16.mxu1 %v2492_v27 }
 0x2ae   : > { %2555 = vmatpush1.bf16.msra.mxu0 %v2554_v26 }
 0x2af   : > { %2557 = vmatprep.subr.bf16.mxu0 %v2556_v30 }
 0x2b0   : > { %2495 = vmatpush1.bf16.msra.mxu1 %v2494_v35 }
 0x2b2   : > { %2559 = vmatpush1.bf16.msra.mxu0 %v2558_v38 }
 0x2b3   : > { %1688 = vmatmul.mubr.f32.vlgmr.msra.gmra.mrb[0].mxu1 %v1479_v40 }
 0x2b5   : > { %1759 = vmatmul.mubr.f32.vlgmr.msra.gmra.mrb[0].mxu0 %v1481_v41 }
 0x386   : > { %v1689_v46 = vpop.f32.mrb[0].mxu1 }
 0x387   : > { %v1690_v47 = vadd.f32 %v1689_v46, %v1616_v43  ;;  %v1691_v48 = vpop.f32.mrb[1].mxu1 }
 0x388   : > { %v1760_v44 = vpop.f32.mrb[0].mxu0  ;;  %v1692_v49 = vadd.f32 %v1691_v48, %v1620_v45 }
 0x389   : > { %v1762_v50 = vpop.f32.mrb[1].mxu0  ;;  %v1761_v51 = vadd.f32 %v1760_v44, %v1690_v47 }
 0x38a   : > { %v1763_v52 = vadd.f32 %v1762_v50, %v1692_v49 }
 0x38b   : > { %1765 = vst [vmem:[%s3738_s5] sm:$0xff] %v1761_v51 }
 0x38c   : > { %1766 = vst [vmem:[%s3738_s5 + $0x8] sm:$0xff] %v1763_v52 }
 0x38d PF: > { %s22_s23 = sadd.s32 1, %s2878_s23   ;;  %s3754_s6 = smov %s3761_s18 }
 0x38e   : > { %p19_p7 = scmp.ge.s32.totalorder %s22_s23, 4   ;;  %s3755_s18 = smov %s2862_s19 }
 0x38f   : > { %s3756_s19 = smov %s2866_s20  ;;  %s3757_s20 = smov %s3062_s11 }
 0x390   : > { %s3758_s21 = smov %s2874_s22  ;;  %s3759_s22 = smov %s3754_s6 }
 0x391   :  { %21 = sbr.rel (!%p19_p7) target bundleno = 7 (0x7), region = 113 }
 0x398   :  { %1788 = vsyncpa [#allocation4], 1 }
 0x399   :  { %1790 = vsyncpa [#allocation4 + $0x1], 1 }
 0x39a   :  { %1791 = vsyncpa [#allocation6], 1 }
 0x39b   :  { %1793 = vsyncpa [#allocation6 + $0x1], 1 }
 0x39c   :  { %1794 = vsyncpa [#allocation9], 1 }

</bundles_post_ra>
